<compile_context>
chip_gen: v7x
topology: tpu7x:2x2x1
jax: 0.10.0
libtpu: 0.0.40
codegen_flags: <defaults>
</compile_context>

<pallas_src>
import functools

import jax
import jax.numpy as jnp
from jax.experimental import pallas as pl
from jax.experimental.pallas import tpu as pltpu

LAYER_NODES = 32
IN_FEATURES = 30
BN_EPS = 1e-5

# Column layout of the packed (32, 16) parameter slab:
#   cols 3k, 3k+1, 3k+2  ->  bias_k, gamma_k, beta_k   (k = 0..3)
#   col 12               ->  w_out (32 weights of the final projection)
#   col 13               ->  b_out (broadcast to all 32 rows)
#   cols 14, 15          ->  zero padding
_WO_COL = 12
_BO_COL = 13
_SLAB_COLS = 16

_LANE = 128
_MAX_CHUNK = 8192   # lane-chunk size used to pipeline the x DMA at large batch


@functools.lru_cache(maxsize=None)
def _vmem_cap_bytes():
    """Physical VMEM per TensorCore (generation aware), with a safe fallback."""
    try:
        return int(pltpu.get_tpu_info().vmem_capacity_bytes)
    except Exception:
        return 64 << 20   # conservative: v7x per-TensorCore VMEM


def _round_up(n, m):
    return ((n + m - 1) // m) * m


def _make_kernel(n_valid, b_pad, chunk, nchunks):
    """Builds the kernel with all shape/config values baked in as constants."""
    needs_mask = (b_pad != n_valid)
    inv_n = 1.0 / float(n_valid)

    def kernel(x_ref, w1t_ref, w_ref, p_ref, out_ref, z_ref, s1_ref, s2_ref):
        c = pl.program_id(0)

        @pl.when(c == 0)
        def _():
            s1_ref[...] = jnp.zeros_like(s1_ref)
            s2_ref[...] = jnp.zeros_like(s2_ref)

        # ---- Layer 1 on this lane chunk --------------------------------
        # (32, chunk) = W1^T (32, 30) contracted with x chunk (chunk, 30) on
        # the feature axis -> activations land directly in the transposed,
        # lane-dense orientation; no wrapper pad / transpose of x needed.
        z = jax.lax.dot_general(
            w1t_ref[...], x_ref[...],
            dimension_numbers=(((1,), (1,)), ((), ())),
            preferred_element_type=jnp.float32)
        z = jnp.maximum(z + p_ref[:, 0:1], 0.0)           # bias b1 + ReLU

        # Accumulate BN1 statistics as chunks land (overlaps the x DMA).
        if needs_mask:
            lane = jax.lax.broadcasted_iota(jnp.int32, (1, chunk), 1) + c * chunk
            zm = z * (lane < n_valid).astype(jnp.float32)
        else:
            zm = z
        s1_ref[...] += jnp.sum(zm, axis=1, keepdims=True)
        s2_ref[...] += jnp.sum(zm * z, axis=1, keepdims=True)

        # Stash the pre-BN layer-1 slab (resident across grid steps).
        if nchunks == 1:
            z_ref[...] = z
        else:
            off = pl.multiple_of(c * chunk, _LANE)        # lane-aligned offset
            z_ref[:, pl.ds(off, chunk)] = z

        # ---- Layers 2..4 + projection once the full batch is resident ---
        def finish():
            if needs_mask:
                lane_f = jax.lax.broadcasted_iota(jnp.int32, (1, b_pad), 1)
                mask = (lane_f < n_valid).astype(jnp.float32)
            else:
                mask = None

            def stats(z_full):
                zm_f = z_full * mask if mask is not None else z_full
                s1 = jnp.sum(zm_f, axis=1, keepdims=True)          # (32, 1)
                s2 = jnp.sum(zm_f * z_full, axis=1, keepdims=True)  # (32, 1)
                return s1, s2

            def scale_shift(k, s1, s2):
                # Fused BN: var = E[z^2] - mean^2; normalize = z*scale + shift.
                mean = s1 * inv_n
                var = s2 * inv_n - mean * mean
                inv_std = jax.lax.rsqrt(var + BN_EPS)
                g = p_ref[:, 3 * k + 1:3 * k + 2]
                be = p_ref[:, 3 * k + 2:3 * k + 3]
                scale = g * inv_std                        # (32, 1)
                shift = be - mean * scale                  # (32, 1)
                return scale, shift

            # Layer 1: pre-activation already resident, stats pre-accumulated.
            z_full = z_ref[...]
            scale, shift = scale_shift(0, s1_ref[...], s2_ref[...])
            h = z_full * scale + shift

            # Layers 2 and 3.
            for k in (1, 2):
                zk = jnp.dot(w_ref[k - 1], h, preferred_element_type=jnp.float32)
                zk = jnp.maximum(zk + p_ref[:, 3 * k:3 * k + 1], 0.0)
                s1, s2 = stats(zk)
                scale, shift = scale_shift(k, s1, s2)
                h = zk * scale + shift

            # Layer 4 with its BN affine folded into the output projection:
            #   out = sum_i wo_i*(z_i*scale_i + shift_i) + bo
            #       = sum_i (wo_i*scale_i)*z_i + (wo . shift + bo)
            z4 = jnp.dot(w_ref[2], h, preferred_element_type=jnp.float32)
            z4 = jnp.maximum(z4 + p_ref[:, 9:10], 0.0)
            s1, s2 = stats(z4)
            scale, shift = scale_shift(3, s1, s2)
            wo = p_ref[:, _WO_COL:_WO_COL + 1]             # (32, 1)
            bo = p_ref[0:1, _BO_COL:_BO_COL + 1]           # (1, 1)
            weff = wo * scale                              # (32, 1)
            ceff = jnp.sum(wo * shift, axis=0, keepdims=True) + bo     # (1, 1)
            out = jnp.sum(z4 * weff, axis=0, keepdims=True) + ceff     # (1, B)
            out_ref[...] = out.astype(out_ref.dtype)

        if nchunks == 1:
            finish()
        else:
            pl.when(c == nchunks - 1)(finish)

    return kernel


def _pack_params(params):
    """Pack the 17 parameter tensors into three VMEM-friendly operands."""
    w1t = params["w1"].T.astype(jnp.float32)                       # (32, 30)
    w_stack = jnp.stack(
        [params["w2"].T, params["w3"].T, params["w4"].T]
    ).astype(jnp.float32)                                          # (3, 32, 32)

    cols = []
    for k in (1, 2, 3, 4):
        cols.append(params[f"b{k}"].reshape(-1))
        cols.append(params[f"g{k}"].reshape(-1))
        cols.append(params[f"be{k}"].reshape(-1))
    cols.append(params["wo"].reshape(-1))                          # (32,)
    cols.append(jnp.full((LAYER_NODES,), params["bo"][0, 0], jnp.float32))
    while len(cols) < _SLAB_COLS:
        cols.append(jnp.zeros((LAYER_NODES,), jnp.float32))
    p_slab = jnp.stack(cols, axis=1).astype(jnp.float32)           # (32, 16)
    return w1t, w_stack, p_slab


@functools.partial(jax.jit, static_argnames=("max_chunk",))
def binary_classification_forward(x, params, *, max_chunk=_MAX_CHUNK):
    """x: (B, 30) float32.  params: dict of weights (see init_params)."""
    batch = x.shape[0]
    max_chunk = max(_LANE, _round_up(int(max_chunk), _LANE))

    # Lane-dense batch padding (BN statistics are masked to the real batch).
    b128 = _round_up(max(batch, 1), _LANE)
    chunk = b128 if b128 <= max_chunk else max_chunk
    b_pad = _round_up(b128, chunk)
    nchunks = b_pad // chunk

    x = x.astype(jnp.float32)
    if b_pad != batch:
        x = jnp.pad(x, ((0, b_pad - batch), (0, 0)))

    w1t, w_stack, p_slab = _pack_params(params)

    # Generation-aware VMEM budget: a handful of resident (32, b_pad) f32
    # slabs + the double-buffered x chunks, capped at ~80% of physical VMEM.
    slab = LAYER_NODES * b_pad * 4
    need = 8 * slab + 2 * chunk * _LANE * 4 + (4 << 20)
    vmem_limit = int(min(int(_vmem_cap_bytes() * 0.8), max(16 << 20, need)))

    kernel = _make_kernel(batch, b_pad, chunk, nchunks)

    out_row = pl.pallas_call(
        kernel,
        out_shape=jax.ShapeDtypeStruct((1, b_pad), jnp.float32),
        grid=(nchunks,),
        in_specs=[
            pl.BlockSpec((chunk, IN_FEATURES), lambda c: (c, 0)),        # x
            pl.BlockSpec((LAYER_NODES, IN_FEATURES), lambda c: (0, 0)),  # W1^T
            pl.BlockSpec((3, LAYER_NODES, LAYER_NODES),
                         lambda c: (0, 0, 0)),                           # W2..4^T
            pl.BlockSpec((LAYER_NODES, _SLAB_COLS), lambda c: (0, 0)),   # slab
        ],
        out_specs=pl.BlockSpec((1, b_pad), lambda c: (0, 0)),
        scratch_shapes=[
            pltpu.VMEM((LAYER_NODES, b_pad), jnp.float32),   # layer-1 pre-BN slab
            pltpu.VMEM((LAYER_NODES, 1), jnp.float32),       # BN1 sum
            pltpu.VMEM((LAYER_NODES, 1), jnp.float32),       # BN1 sum of squares
        ],
        compiler_params=pltpu.CompilerParams(
            dimension_semantics=("arbitrary",),
            vmem_limit_bytes=vmem_limit),
    )(x, w1t, w_stack, p_slab)

    return out_row[:, :batch].reshape(batch, 1)


def _linear_init(key, fan_in, fan_out):
    """PyTorch nn.Linear default init: U(-1/sqrt(fan_in), 1/sqrt(fan_in))."""
    kw, kb = jax.random.split(key)
    bound = 1.0 / jnp.sqrt(jnp.float32(fan_in))
    w = jax.random.uniform(kw, (fan_in, fan_out), jnp.float32, -bound, bound)
    b = jax.random.uniform(kb, (1, fan_out), jnp.float32, -bound, bound)
    return w, b


def init_params(key):
    keys = jax.random.split(key, 5)
    w1, b1 = _linear_init(keys[0], IN_FEATURES, LAYER_NODES)
    w2, b2 = _linear_init(keys[1], LAYER_NODES, LAYER_NODES)
    w3, b3 = _linear_init(keys[2], LAYER_NODES, LAYER_NODES)
    w4, b4 = _linear_init(keys[3], LAYER_NODES, LAYER_NODES)
    wo, bo = _linear_init(keys[4], LAYER_NODES, 1)
    ones = jnp.ones((1, LAYER_NODES), jnp.float32)
    zeros = jnp.zeros((1, LAYER_NODES), jnp.float32)
    return dict(
        w1=w1, b1=b1, g1=ones, be1=zeros,
        w2=w2, b2=b2, g2=ones, be2=zeros,
        w3=w3, b3=b3, g3=ones, be3=zeros,
        w4=w4, b4=b4, g4=ones, be4=zeros,
        wo=wo, bo=bo,
    )


def _reference_forward(x, p):
    """Pure-JAX reference (training-mode BN, natural orientation)."""
    def blk(h, w, b, g, be):
        z = jnp.maximum(h @ w + b, 0.0)
        mean = jnp.mean(z, axis=0, keepdims=True)
        var = jnp.mean((z - mean) ** 2, axis=0, keepdims=True)
        return g * (z - mean) * jax.lax.rsqrt(var + BN_EPS) + be
    h = x
    h = blk(h, p["w1"], p["b1"], p["g1"], p["be1"])
    h = blk(h, p["w2"], p["b2"], p["g2"], p["be2"])
    h = blk(h, p["w3"], p["b3"], p["g3"], p["be3"])
    h = blk(h, p["w4"], p["b4"], p["g4"], p["be4"])
    return h @ p["wo"] + p["bo"]


if __name__ == "__main__":
    key = jax.random.PRNGKey(0)
    k_x, k_x2, k_p = jax.random.split(key, 3)
    params = init_params(k_p)

    # Small-batch check (single chunk, masked 8 -> 128 lane padding).
    batch = 8
    x = jax.random.normal(k_x, (batch, IN_FEATURES), jnp.float32)
    out = jax.block_until_ready(binary_classification_forward(x, params))
    ref = _reference_forward(x, params)
    assert out.shape == (batch, 1)
    assert jnp.allclose(out, ref, atol=2e-4, rtol=2e-4), "mismatch vs reference"

    # Exercise the multi-chunk pipelined path at a still-small shape
    # (batch 300 -> 3 chunks of 128 lanes, last chunk partially masked).
    batch2 = 300
    x2 = jax.random.normal(k_x2, (batch2, IN_FEATURES), jnp.float32)
    out2 = jax.block_until_ready(
        binary_classification_forward(x2, params, max_chunk=128))
    ref2 = _reference_forward(x2, params)
    assert out2.shape == (batch2, 1)
    assert jnp.allclose(out2, ref2, atol=2e-4, rtol=2e-4), "mismatch (chunked)"

    print("KERNEL_OK")
</pallas_src>

<mosaic_0001>
module attributes {stable_mosaic.version = 11 : i64} {
  func.func @kernel(%arg0: i32, %arg1: memref<128x30xf32, #tpu.memory_space<vmem>>, %arg2: memref<32x30xf32, #tpu.memory_space<vmem>>, %arg3: memref<3x32x32xf32, #tpu.memory_space<vmem>>, %arg4: memref<32x16xf32, #tpu.memory_space<vmem>>, %arg5: memref<1x128xf32, #tpu.memory_space<vmem>>, %arg6: memref<32x128xf32, #tpu.memory_space<vmem>>, %arg7: memref<32x1xf32, #tpu.memory_space<vmem>>, %arg8: memref<32x1xf32, #tpu.memory_space<vmem>>) attributes {dimension_semantics = [#tpu.dimension_semantics<arbitrary>], iteration_bounds = array<i64: 1>, scalar_prefetch = 0 : i64, scratch_operands = 3 : i64, tpu.core_type = #tpu.core_type<tc>, window_params = [{transform_indices = @transform_0, window_bounds = array<i64: 128, 30>}, {pipeline_mode = #tpu.pipeline_mode<synchronous>, transform_indices = @transform_1, window_bounds = array<i64: 32, 30>}, {pipeline_mode = #tpu.pipeline_mode<synchronous>, transform_indices = @transform_2, window_bounds = array<i64: 3, 32, 32>}, {pipeline_mode = #tpu.pipeline_mode<synchronous>, transform_indices = @transform_3, window_bounds = array<i64: 32, 16>}, {pipeline_mode = #tpu.pipeline_mode<synchronous>, transform_indices = @transform_4, window_bounds = array<i64: 1, 128>}]} {
    %c0_i32 = arith.constant 0 : i32
    %0 = arith.cmpi eq, %arg0, %c0_i32 : i32
    %1 = arith.extui %0 : i1 to i32
    %c0_i32_0 = arith.constant 0 : i32
    %2 = arith.cmpi ne, %1, %c0_i32_0 : i32
    scf.if %2 {
      %cst_76 = arith.constant 0.000000e+00 : f32
      %168 = vector.broadcast %cst_76 : f32 to vector<32x1xf32>
      %c0_77 = arith.constant 0 : index
      %c0_78 = arith.constant 0 : index
      %169 = vector.load %arg7[%c0_77, %c0_78] : memref<32x1xf32, #tpu.memory_space<vmem>>, vector<32x1xf32>
      tpu.vector_store %arg7[%c0_77, %c0_78], %168 {strides = array<i32>} : memref<32x1xf32, #tpu.memory_space<vmem>>, vector<32x1xf32>,
      %cst_79 = arith.constant 0.000000e+00 : f32
      %170 = vector.broadcast %cst_79 : f32 to vector<32x1xf32>
      %c0_80 = arith.constant 0 : index
      %c0_81 = arith.constant 0 : index
      %171 = vector.load %arg8[%c0_80, %c0_81] : memref<32x1xf32, #tpu.memory_space<vmem>>, vector<32x1xf32>
      tpu.vector_store %arg8[%c0_80, %c0_81], %170 {strides = array<i32>} : memref<32x1xf32, #tpu.memory_space<vmem>>, vector<32x1xf32>,
    } else {
    }
    %c0 = arith.constant 0 : index
    %c0_1 = arith.constant 0 : index
    %3 = vector.load %arg2[%c0, %c0_1] : memref<32x30xf32, #tpu.memory_space<vmem>>, vector<32x30xf32>
    %c0_2 = arith.constant 0 : index
    %c0_3 = arith.constant 0 : index
    %4 = vector.load %arg1[%c0_2, %c0_3] : memref<128x30xf32, #tpu.memory_space<vmem>>, vector<128x30xf32>
    %cst = arith.constant dense<0.000000e+00> : vector<32x128xf32>
    %5 = tpu.matmul %3, %4, %cst {dimension_numbers = #tpu.dot_dimension_numbers<[1], [1], [0], [0], [0, 0, 1, 0], [], []>} : vector<32x30xf32>, vector<128x30xf32>, vector<32x128xf32> -> vector<32x128xf32>
    %c0_4 = arith.constant 0 : index
    %c0_5 = arith.constant 0 : index
    %6 = vector.load %arg4[%c0_4, %c0_5] : memref<32x16xf32, #tpu.memory_space<vmem>>, vector<32x1xf32>
    %7 = vector.broadcast %6 : vector<32x1xf32> to vector<32x128xf32>
    %8 = arith.addf %5, %7 : vector<32x128xf32>
    %cst_6 = arith.constant 0.000000e+00 : f32
    %9 = vector.broadcast %cst_6 : f32 to vector<32x128xf32>
    %10 = arith.maximumf %8, %9 : vector<32x128xf32>
    %11 = tpu.iota {dimensions = array<i32: 1>} : vector<1x128xi32>
    %c128_i32 = arith.constant 128 : i32
    %12 = arith.muli %arg0, %c128_i32 : i32
    %13 = vector.broadcast %12 : i32 to vector<1x128xi32>
    %14 = arith.addi %11, %13 : vector<1x128xi32>
    %c8_i32 = arith.constant 8 : i32
    %15 = vector.broadcast %c8_i32 : i32 to vector<1x128xi32>
    %16 = arith.cmpi slt, %14, %15 : vector<1x128xi32>
    %17 = arith.extui %16 : vector<1x128xi1> to vector<1x128xi32>
    %18 = arith.sitofp %17 : vector<1x128xi32> to vector<1x128xf32>
    %19 = vector.broadcast %18 : vector<1x128xf32> to vector<32x128xf32>
    %20 = arith.mulf %10, %19 : vector<32x128xf32>
    %c0_7 = arith.constant 0 : index
    %c0_8 = arith.constant 0 : index
    %21 = vector.load %arg7[%c0_7, %c0_8] : memref<32x1xf32, #tpu.memory_space<vmem>>, vector<32x1xf32>
    %cst_9 = arith.constant dense<0.000000e+00> : vector<32xf32>
    %22 = vector.multi_reduction <add>, %20, %cst_9 [1] : vector<32x128xf32> to vector<32xf32>
    %23 = vector.shape_cast %22 : vector<32xf32> to vector<32x1xf32>
    %24 = arith.addf %21, %23 : vector<32x1xf32>
    %c0_10 = arith.constant 0 : index
    %c0_11 = arith.constant 0 : index
    %25 = vector.load %arg7[%c0_10, %c0_11] : memref<32x1xf32, #tpu.memory_space<vmem>>, vector<32x1xf32>
    tpu.vector_store %arg7[%c0_10, %c0_11], %24 {strides = array<i32>} : memref<32x1xf32, #tpu.memory_space<vmem>>, vector<32x1xf32>,
    %c0_12 = arith.constant 0 : index
    %c0_13 = arith.constant 0 : index
    %26 = vector.load %arg8[%c0_12, %c0_13] : memref<32x1xf32, #tpu.memory_space<vmem>>, vector<32x1xf32>
    %27 = arith.mulf %20, %10 : vector<32x128xf32>
    %cst_14 = arith.constant dense<0.000000e+00> : vector<32xf32>
    %28 = vector.multi_reduction <add>, %27, %cst_14 [1] : vector<32x128xf32> to vector<32xf32>
    %29 = vector.shape_cast %28 : vector<32xf32> to vector<32x1xf32>
    %30 = arith.addf %26, %29 : vector<32x1xf32>
    %c0_15 = arith.constant 0 : index
    %c0_16 = arith.constant 0 : index
    %31 = vector.load %arg8[%c0_15, %c0_16] : memref<32x1xf32, #tpu.memory_space<vmem>>, vector<32x1xf32>
    tpu.vector_store %arg8[%c0_15, %c0_16], %30 {strides = array<i32>} : memref<32x1xf32, #tpu.memory_space<vmem>>, vector<32x1xf32>,
    %c0_17 = arith.constant 0 : index
    %c0_18 = arith.constant 0 : index
    %32 = vector.load %arg6[%c0_17, %c0_18] : memref<32x128xf32, #tpu.memory_space<vmem>>, vector<32x128xf32>
    tpu.vector_store %arg6[%c0_17, %c0_18], %10 {strides = array<i32>} : memref<32x128xf32, #tpu.memory_space<vmem>>, vector<32x128xf32>,
    %33 = tpu.iota {dimensions = array<i32: 1>} : vector<1x128xi32>
    %c8_i32_19 = arith.constant 8 : i32
    %34 = vector.broadcast %c8_i32_19 : i32 to vector<1x128xi32>
    %35 = arith.cmpi slt, %33, %34 : vector<1x128xi32>
    %36 = arith.extui %35 : vector<1x128xi1> to vector<1x128xi32>
    %37 = arith.sitofp %36 : vector<1x128xi32> to vector<1x128xf32>
    %c0_20 = arith.constant 0 : index
    %c0_21 = arith.constant 0 : index
    %38 = vector.load %arg6[%c0_20, %c0_21] : memref<32x128xf32, #tpu.memory_space<vmem>>, vector<32x128xf32>
    %c0_22 = arith.constant 0 : index
    %c0_23 = arith.constant 0 : index
    %39 = vector.load %arg7[%c0_22, %c0_23] : memref<32x1xf32, #tpu.memory_space<vmem>>, vector<32x1xf32>
    %c0_24 = arith.constant 0 : index
    %c0_25 = arith.constant 0 : index
    %40 = vector.load %arg8[%c0_24, %c0_25] : memref<32x1xf32, #tpu.memory_space<vmem>>, vector<32x1xf32>
    %cst_26 = arith.constant 1.250000e-01 : f32
    %41 = vector.broadcast %cst_26 : f32 to vector<32x1xf32>
    %42 = arith.mulf %39, %41 : vector<32x1xf32>
    %cst_27 = arith.constant 1.250000e-01 : f32
    %43 = vector.broadcast %cst_27 : f32 to vector<32x1xf32>
    %44 = arith.mulf %40, %43 : vector<32x1xf32>
    %45 = arith.mulf %42, %42 : vector<32x1xf32>
    %46 = arith.subf %44, %45 : vector<32x1xf32>
    %cst_28 = arith.constant 9.99999974E-6 : f32
    %47 = vector.broadcast %cst_28 : f32 to vector<32x1xf32>
    %48 = arith.addf %46, %47 : vector<32x1xf32>
    %49 = math.rsqrt %48 : vector<32x1xf32>
    %c0_29 = arith.constant 0 : index
    %c1 = arith.constant 1 : index
    %50 = vector.load %arg4[%c0_29, %c1] : memref<32x16xf32, #tpu.memory_space<vmem>>, vector<32x1xf32>
    %c0_30 = arith.constant 0 : index
    %c2 = arith.constant 2 : index
    %51 = vector.load %arg4[%c0_30, %c2] : memref<32x16xf32, #tpu.memory_space<vmem>>, vector<32x1xf32>
    %52 = arith.mulf %50, %49 : vector<32x1xf32>
    %53 = arith.mulf %42, %52 : vector<32x1xf32>
    %54 = arith.subf %51, %53 : vector<32x1xf32>
    %55 = vector.broadcast %52 : vector<32x1xf32> to vector<32x128xf32>
    %56 = arith.mulf %38, %55 : vector<32x128xf32>
    %57 = vector.broadcast %54 : vector<32x1xf32> to vector<32x128xf32>
    %58 = arith.addf %56, %57 : vector<32x128xf32>
    %c0_31 = arith.constant 0 : index
    %c0_32 = arith.constant 0 : index
    %c0_33 = arith.constant 0 : index
    %59 = vector.load %arg3[%c0_31, %c0_32, %c0_33] : memref<3x32x32xf32, #tpu.memory_space<vmem>>, vector<1x32x32xf32>
    %60 = vector.shape_cast %59 : vector<1x32x32xf32> to vector<32x32xf32>
    %cst_34 = arith.constant dense<0.000000e+00> : vector<32x128xf32>
    %61 = tpu.matmul %60, %58, %cst_34 {dimension_numbers = #tpu.dot_dimension_numbers<[1], [0], [0], [1], [0, 0, 1, 1], [], []>} : vector<32x32xf32>, vector<32x128xf32>, vector<32x128xf32> -> vector<32x128xf32>
    %c0_35 = arith.constant 0 : index
    %c3 = arith.constant 3 : index
    %62 = vector.load %arg4[%c0_35, %c3] : memref<32x16xf32, #tpu.memory_space<vmem>>, vector<32x1xf32>
    %63 = vector.broadcast %62 : vector<32x1xf32> to vector<32x128xf32>
    %64 = arith.addf %61, %63 : vector<32x128xf32>
    %cst_36 = arith.constant 0.000000e+00 : f32
    %65 = vector.broadcast %cst_36 : f32 to vector<32x128xf32>
    %66 = arith.maximumf %64, %65 : vector<32x128xf32>
    %67 = vector.broadcast %37 : vector<1x128xf32> to vector<32x128xf32>
    %68 = arith.mulf %66, %67 : vector<32x128xf32>
    %cst_37 = arith.constant dense<0.000000e+00> : vector<32xf32>
    %69 = vector.multi_reduction <add>, %68, %cst_37 [1] : vector<32x128xf32> to vector<32xf32>
    %70 = vector.shape_cast %69 : vector<32xf32> to vector<32x1xf32>
    %71 = arith.mulf %68, %66 : vector<32x128xf32>
    %cst_38 = arith.constant dense<0.000000e+00> : vector<32xf32>
    %72 = vector.multi_reduction <add>, %71, %cst_38 [1] : vector<32x128xf32> to vector<32xf32>
    %73 = vector.shape_cast %72 : vector<32xf32> to vector<32x1xf32>
    %cst_39 = arith.constant 1.250000e-01 : f32
    %74 = vector.broadcast %cst_39 : f32 to vector<32x1xf32>
    %75 = arith.mulf %70, %74 : vector<32x1xf32>
    %cst_40 = arith.constant 1.250000e-01 : f32
    %76 = vector.broadcast %cst_40 : f32 to vector<32x1xf32>
    %77 = arith.mulf %73, %76 : vector<32x1xf32>
    %78 = arith.mulf %75, %75 : vector<32x1xf32>
    %79 = arith.subf %77, %78 : vector<32x1xf32>
    %cst_41 = arith.constant 9.99999974E-6 : f32
    %80 = vector.broadcast %cst_41 : f32 to vector<32x1xf32>
    %81 = arith.addf %79, %80 : vector<32x1xf32>
    %82 = math.rsqrt %81 : vector<32x1xf32>
    %c0_42 = arith.constant 0 : index
    %c4 = arith.constant 4 : index
    %83 = vector.load %arg4[%c0_42, %c4] : memref<32x16xf32, #tpu.memory_space<vmem>>, vector<32x1xf32>
    %c0_43 = arith.constant 0 : index
    %c5 = arith.constant 5 : index
    %84 = vector.load %arg4[%c0_43, %c5] : memref<32x16xf32, #tpu.memory_space<vmem>>, vector<32x1xf32>
    %85 = arith.mulf %83, %82 : vector<32x1xf32>
    %86 = arith.mulf %75, %85 : vector<32x1xf32>
    %87 = arith.subf %84, %86 : vector<32x1xf32>
    %88 = vector.broadcast %85 : vector<32x1xf32> to vector<32x128xf32>
    %89 = arith.mulf %66, %88 : vector<32x128xf32>
    %90 = vector.broadcast %87 : vector<32x1xf32> to vector<32x128xf32>
    %91 = arith.addf %89, %90 : vector<32x128xf32>
    %c1_44 = arith.constant 1 : index
    %c0_45 = arith.constant 0 : index
    %c0_46 = arith.constant 0 : index
    %92 = vector.load %arg3[%c1_44, %c0_45, %c0_46] : memref<3x32x32xf32, #tpu.memory_space<vmem>>, vector<1x32x32xf32>
    %93 = vector.shape_cast %92 : vector<1x32x32xf32> to vector<32x32xf32>
    %cst_47 = arith.constant dense<0.000000e+00> : vector<32x128xf32>
    %94 = tpu.matmul %93, %91, %cst_47 {dimension_numbers = #tpu.dot_dimension_numbers<[1], [0], [0], [1], [0, 0, 1, 1], [], []>} : vector<32x32xf32>, vector<32x128xf32>, vector<32x128xf32> -> vector<32x128xf32>
    %c0_48 = arith.constant 0 : index
    %c6 = arith.constant 6 : index
    %95 = vector.load %arg4[%c0_48, %c6] : memref<32x16xf32, #tpu.memory_space<vmem>>, vector<32x1xf32>
    %96 = vector.broadcast %95 : vector<32x1xf32> to vector<32x128xf32>
    %97 = arith.addf %94, %96 : vector<32x128xf32>
    %cst_49 = arith.constant 0.000000e+00 : f32
    %98 = vector.broadcast %cst_49 : f32 to vector<32x128xf32>
    %99 = arith.maximumf %97, %98 : vector<32x128xf32>
    %100 = vector.broadcast %37 : vector<1x128xf32> to vector<32x128xf32>
    %101 = arith.mulf %99, %100 : vector<32x128xf32>
    %cst_50 = arith.constant dense<0.000000e+00> : vector<32xf32>
    %102 = vector.multi_reduction <add>, %101, %cst_50 [1] : vector<32x128xf32> to vector<32xf32>
    %103 = vector.shape_cast %102 : vector<32xf32> to vector<32x1xf32>
    %104 = arith.mulf %101, %99 : vector<32x128xf32>
    %cst_51 = arith.constant dense<0.000000e+00> : vector<32xf32>
    %105 = vector.multi_reduction <add>, %104, %cst_51 [1] : vector<32x128xf32> to vector<32xf32>
    %106 = vector.shape_cast %105 : vector<32xf32> to vector<32x1xf32>
    %cst_52 = arith.constant 1.250000e-01 : f32
    %107 = vector.broadcast %cst_52 : f32 to vector<32x1xf32>
    %108 = arith.mulf %103, %107 : vector<32x1xf32>
    %cst_53 = arith.constant 1.250000e-01 : f32
    %109 = vector.broadcast %cst_53 : f32 to vector<32x1xf32>
    %110 = arith.mulf %106, %109 : vector<32x1xf32>
    %111 = arith.mulf %108, %108 : vector<32x1xf32>
    %112 = arith.subf %110, %111 : vector<32x1xf32>
    %cst_54 = arith.constant 9.99999974E-6 : f32
    %113 = vector.broadcast %cst_54 : f32 to vector<32x1xf32>
    %114 = arith.addf %112, %113 : vector<32x1xf32>
    %115 = math.rsqrt %114 : vector<32x1xf32>
    %c0_55 = arith.constant 0 : index
    %c7 = arith.constant 7 : index
    %116 = vector.load %arg4[%c0_55, %c7] : memref<32x16xf32, #tpu.memory_space<vmem>>, vector<32x1xf32>
    %c0_56 = arith.constant 0 : index
    %c8 = arith.constant 8 : index
    %117 = vector.load %arg4[%c0_56, %c8] : memref<32x16xf32, #tpu.memory_space<vmem>>, vector<32x1xf32>
    %118 = arith.mulf %116, %115 : vector<32x1xf32>
    %119 = arith.mulf %108, %118 : vector<32x1xf32>
    %120 = arith.subf %117, %119 : vector<32x1xf32>
    %121 = vector.broadcast %118 : vector<32x1xf32> to vector<32x128xf32>
    %122 = arith.mulf %99, %121 : vector<32x128xf32>
    %123 = vector.broadcast %120 : vector<32x1xf32> to vector<32x128xf32>
    %124 = arith.addf %122, %123 : vector<32x128xf32>
    %c2_57 = arith.constant 2 : index
    %c0_58 = arith.constant 0 : index
    %c0_59 = arith.constant 0 : index
    %125 = vector.load %arg3[%c2_57, %c0_58, %c0_59] : memref<3x32x32xf32, #tpu.memory_space<vmem>>, vector<1x32x32xf32>
    %126 = vector.shape_cast %125 : vector<1x32x32xf32> to vector<32x32xf32>
    %cst_60 = arith.constant dense<0.000000e+00> : vector<32x128xf32>
    %127 = tpu.matmul %126, %124, %cst_60 {dimension_numbers = #tpu.dot_dimension_numbers<[1], [0], [0], [1], [0, 0, 1, 1], [], []>} : vector<32x32xf32>, vector<32x128xf32>, vector<32x128xf32> -> vector<32x128xf32>
    %c0_61 = arith.constant 0 : index
    %c9 = arith.constant 9 : index
    %128 = vector.load %arg4[%c0_61, %c9] : memref<32x16xf32, #tpu.memory_space<vmem>>, vector<32x1xf32>
    %129 = vector.broadcast %128 : vector<32x1xf32> to vector<32x128xf32>
    %130 = arith.addf %127, %129 : vector<32x128xf32>
    %cst_62 = arith.constant 0.000000e+00 : f32
    %131 = vector.broadcast %cst_62 : f32 to vector<32x128xf32>
    %132 = arith.maximumf %130, %131 : vector<32x128xf32>
    %133 = vector.broadcast %37 : vector<1x128xf32> to vector<32x128xf32>
    %134 = arith.mulf %132, %133 : vector<32x128xf32>
    %cst_63 = arith.constant dense<0.000000e+00> : vector<32xf32>
    %135 = vector.multi_reduction <add>, %134, %cst_63 [1] : vector<32x128xf32> to vector<32xf32>
    %136 = vector.shape_cast %135 : vector<32xf32> to vector<32x1xf32>
    %137 = arith.mulf %134, %132 : vector<32x128xf32>
    %cst_64 = arith.constant dense<0.000000e+00> : vector<32xf32>
    %138 = vector.multi_reduction <add>, %137, %cst_64 [1] : vector<32x128xf32> to vector<32xf32>
    %139 = vector.shape_cast %138 : vector<32xf32> to vector<32x1xf32>
    %cst_65 = arith.constant 1.250000e-01 : f32
    %140 = vector.broadcast %cst_65 : f32 to vector<32x1xf32>
    %141 = arith.mulf %136, %140 : vector<32x1xf32>
    %cst_66 = arith.constant 1.250000e-01 : f32
    %142 = vector.broadcast %cst_66 : f32 to vector<32x1xf32>
    %143 = arith.mulf %139, %142 : vector<32x1xf32>
    %144 = arith.mulf %141, %141 : vector<32x1xf32>
    %145 = arith.subf %143, %144 : vector<32x1xf32>
    %cst_67 = arith.constant 9.99999974E-6 : f32
    %146 = vector.broadcast %cst_67 : f32 to vector<32x1xf32>
    %147 = arith.addf %145, %146 : vector<32x1xf32>
    %148 = math.rsqrt %147 : vector<32x1xf32>
    %c0_68 = arith.constant 0 : index
    %c10 = arith.constant 10 : index
    %149 = vector.load %arg4[%c0_68, %c10] : memref<32x16xf32, #tpu.memory_space<vmem>>, vector<32x1xf32>
    %c0_69 = arith.constant 0 : index
    %c11 = arith.constant 11 : index
    %150 = vector.load %arg4[%c0_69, %c11] : memref<32x16xf32, #tpu.memory_space<vmem>>, vector<32x1xf32>
    %151 = arith.mulf %149, %148 : vector<32x1xf32>
    %152 = arith.mulf %141, %151 : vector<32x1xf32>
    %153 = arith.subf %150, %152 : vector<32x1xf32>
    %c0_70 = arith.constant 0 : index
    %c12 = arith.constant 12 : index
    %154 = vector.load %arg4[%c0_70, %c12] : memref<32x16xf32, #tpu.memory_space<vmem>>, vector<32x1xf32>
    %c0_71 = arith.constant 0 : index
    %c13 = arith.constant 13 : index
    %155 = vector.load %arg4[%c0_71, %c13] : memref<32x16xf32, #tpu.memory_space<vmem>>, vector<1x1xf32>
    %156 = arith.mulf %154, %151 : vector<32x1xf32>
    %157 = arith.mulf %154, %153 : vector<32x1xf32>
    %cst_72 = arith.constant dense<0.000000e+00> : vector<1xf32>
    %158 = vector.multi_reduction <add>, %157, %cst_72 [0] : vector<32x1xf32> to vector<1xf32>
    %159 = vector.shape_cast %158 : vector<1xf32> to vector<1x1xf32>
    %160 = arith.addf %159, %155 : vector<1x1xf32>
    %161 = vector.broadcast %156 : vector<32x1xf32> to vector<32x128xf32>
    %162 = arith.mulf %132, %161 : vector<32x128xf32>
    %cst_73 = arith.constant dense<0.000000e+00> : vector<128xf32>
    %163 = vector.multi_reduction <add>, %162, %cst_73 [0] : vector<32x128xf32> to vector<128xf32>
    %164 = vector.shape_cast %163 : vector<128xf32> to vector<1x128xf32>
    %165 = vector.broadcast %160 : vector<1x1xf32> to vector<1x128xf32>
    %166 = arith.addf %164, %165 : vector<1x128xf32>
    %c0_74 = arith.constant 0 : index
    %c0_75 = arith.constant 0 : index
    %167 = vector.load %arg5[%c0_74, %c0_75] : memref<1x128xf32, #tpu.memory_space<vmem>>, vector<1x128xf32>
    tpu.vector_store %arg5[%c0_74, %c0_75], %166 {strides = array<i32>} : memref<1x128xf32, #tpu.memory_space<vmem>>, vector<1x128xf32>,
    return
  }
  func.func @transform_0(%arg0: i32) -> (i32, i32) {
    %c0_i32 = arith.constant 0 : i32
    %c0_i32_0 = arith.constant 0 : i32
    return %arg0, %c0_i32 : i32, i32
  }
  func.func @transform_1(%arg0: i32) -> (i32, i32) {
    %c0_i32 = arith.constant 0 : i32
    %c0_i32_0 = arith.constant 0 : i32
    %c0_i32_1 = arith.constant 0 : i32
    return %c0_i32, %c0_i32_0 : i32, i32
  }
  func.func @transform_2(%arg0: i32) -> (i32, i32, i32) {
    %c0_i32 = arith.constant 0 : i32
    %c0_i32_0 = arith.constant 0 : i32
    %c0_i32_1 = arith.constant 0 : i32
    %c0_i32_2 = arith.constant 0 : i32
    return %c0_i32, %c0_i32_0, %c0_i32_1 : i32, i32, i32
  }
  func.func @transform_3(%arg0: i32) -> (i32, i32) {
    %c0_i32 = arith.constant 0 : i32
    %c0_i32_0 = arith.constant 0 : i32
    %c0_i32_1 = arith.constant 0 : i32
    return %c0_i32, %c0_i32_0 : i32, i32
  }
  func.func @transform_4(%arg0: i32) -> (i32, i32) {
    %c0_i32 = arith.constant 0 : i32
    %c0_i32_0 = arith.constant 0 : i32
    %c0_i32_1 = arith.constant 0 : i32
    return %c0_i32, %c0_i32_0 : i32, i32
  }
}

</mosaic_0001>

<bundles_post_ra>
// kernel: binary_classification_forward.1
= control target key start
LH: loop header
LB: loop body
LE: loop exit
PB: predicated region body
PF: predicated region fallthrough
CT: control target
= control target key end

     0   :  { %vm74_vm0 = vcmask 244736   ;;  %v1541_v3 = vmov 0   ;;  %vm21_vm2 = vcmask 7168   ;;  %v1542_v34 = vmov 0.0   ;;  %s1544_s10 = smov 127   ;;  %s1546_s11 = smov 2   ;;  %s1961_s0 = inlined_call_operand.vmem [shape: f32[128,30], index: 0, kind: input, shape index: {}]   ;;  %s1962_s1 = inlined_call_operand.vmem [shape: f32[32,30], index: 1, kind: input, shape index: {}]   ;;  %s1963_s3 = inlined_call_operand.vmem [shape: f32[32,16], index: 3, kind: input, shape index: {}]   ;;  %s1964_s2 = inlined_call_operand.vmem [shape: f32[3,32,32], index: 2, kind: input, shape index: {}]   ;;  %s1965_s4 = inlined_call_operand.vmem [shape: f32[1,128], index: 4, kind: output, shape index: {}]  }
   0x1   :  { %v34_v0 = vld [vmem:[%s1961_s0] sm:$0xff]  ;;  %v35_v1 = vld [vmem:[%s1961_s0 + $0x8] sm:$0xff]  ;;  %vm1589_vm1 = vmpackc.low %vm74_vm0, %vm74_vm0  ;;  %1483 = vset.pattern.permute.xlu0 %v1541_v3  ;;  %1484 = vset.pattern.permute.xlu1 %v1541_v3  ;;  %23 = vst.msk [vmem:[#allocation3 + $0x8] sm:$0xff] %vm21_vm2, %v1542_v34  ;;  %v224_v35 = vlaneseq  ;;  %vm456_vm4 = vcmask 261120   ;;  %vm1167_vm5 = vcmask 105568  }
   0x2   :  { %v1396_v4 = vpack.c.bf16 %v35_v1, %v34_v0  ;;  %v36_v5 = vld [vmem:[%s1961_s0 + $0x10] sm:$0xff]  ;;  %v37_v6 = vld [vmem:[%s1961_s0 + $0x18] sm:$0xff]  ;;  %v30_v8 = vld [vmem:[%s1962_s1] sm:$0xff]  ;;  %22 = vst.msk [vmem:[#allocation3] sm:$0xff] %vm21_vm2, %v1542_v34 }
   0x3   :  { %v1402_v7 = vpack.c.bf16 %v37_v6, %v36_v5  ;;  %v38_v9 = vld [vmem:[%s1961_s0 + $0x20] sm:$0xff]  ;;  %v39_v10 = vld [vmem:[%s1961_s0 + $0x28] sm:$0xff]  ;;  %1348 = vmatprep.mubr.msk.f32.mxu0 %vm74_vm0, %v30_v8  ;;  %v1623_v12 = vld [vmem:[%s1963_s3 + $0x10] sm:$0xff]  ;;  %24 = vst.msk [vmem:[#allocation3 + $0x10] sm:$0xff] %vm21_vm2, %v1542_v34  ;;  %v225_v37 = vand.u32 127, %v224_v35 }
   0x4   :  { %1398 = vmatprep.subr.msk.bf16.mxu0 %vm1589_vm1, %v1396_v4  ;;  %v1618_v11 = vld [vmem:[%s1963_s3] sm:$0xff]  ;;  %66 = vperm.xlu1 %1484, %v1623_v12   ;;  %v1408_v13 = vpack.c.bf16 %v39_v10, %v38_v9  ;;  %v1630_v14 = vld [vmem:[%s1963_s3 + $0x8] sm:$0xff]  ;;  %v1635_v15 = vld [vmem:[%s1963_s3 + $0x18] sm:$0xff]  ;;  %25 = vst.msk [vmem:[#allocation3 + $0x18] sm:$0xff] %vm21_vm2, %v1542_v34 }
   0x5   :  { %1401 = vmatpush3.bf16.xpose.msk.msra.mxu0 %vm1589_vm1, %v1396_v4  ;;  %56 = vperm.xlu0 %1483, %v1618_v11   ;;  %v40_v16 = vld [vmem:[%s1961_s0 + $0x30] sm:$0xff]  ;;  %v41_v17 = vld [vmem:[%s1961_s0 + $0x38] sm:$0xff]  ;;  %v42_v19 = vld [vmem:[%s1961_s0 + $0x40] sm:$0xff]  ;;  %26 = vst.msk [vmem:[#allocation4] sm:$0xff] %vm21_vm2, %v1542_v34  ;;  %vm229_vm3 = vcmp.lt.s32.totalorder %v225_v37, 8 }
   0x6   :  { %1404 = vmatprep.subr.msk.bf16.mxu0 %vm1589_vm1, %v1402_v7  ;;  %v1414_v18 = vpack.c.bf16 %v41_v17, %v40_v16  ;;  %v43_v20 = vld [vmem:[%s1961_s0 + $0x48] sm:$0xff]  ;;  %v44_v22 = vld [vmem:[%s1961_s0 + $0x50] sm:$0xff]  ;;  %v45_v23 = vld [vmem:[%s1961_s0 + $0x58] sm:$0xff]  ;;  %27 = vst.msk [vmem:[#allocation4 + $0x8] sm:$0xff] %vm21_vm2, %v1542_v34  ;;  %v1715_v44 = vsel %vm229_vm3, 1.0, %v1542_v34 }
   0x7   :  { %v1420_v21 = vpack.c.bf16 %v43_v20, %v42_v19  ;;  %v1426_v24 = vpack.c.bf16 %v45_v23, %v44_v22  ;;  %v46_v25 = vld [vmem:[%s1961_s0 + $0x60] sm:$0xff]  ;;  %v47_v26 = vld [vmem:[%s1961_s0 + $0x68] sm:$0xff]  ;;  %v48_v28 = vld [vmem:[%s1961_s0 + $0x70] sm:$0xff]  ;;  %28 = vst.msk [vmem:[#allocation4 + $0x10] sm:$0xff] %vm21_vm2, %v1542_v34 }
   0x8   :  { %71 = vperm.xlu1 %1484, %v1635_v15   ;;  %v1432_v27 = vpack.c.bf16 %v47_v26, %v46_v25  ;;  %v49_v29 = vld [vmem:[%s1961_s0 + $0x78] sm:$0xff]  ;;  %v31_v31 = vld [vmem:[%s1962_s1 + $0x8] sm:$0xff]  ;;  %v32_v32 = vld [vmem:[%s1962_s1 + $0x10] sm:$0xff]  ;;  %29 = vst.msk [vmem:[#allocation4 + $0x18] sm:$0xff] %vm21_vm2, %v1542_v34 }
   0x9   :  { %61 = vperm.xlu0 %1483, %v1630_v14   ;;  %v1438_v30 = vpack.c.bf16 %v49_v29, %v48_v28  ;;  %v33_v33 = vld [vmem:[%s1962_s1 + $0x18] sm:$0xff]  ;;  %v237_v62 = vld [vmem:[#allocation3 + $0x8] sm:$0xff]  ;;  %v236_v63 = vld [vmem:[#allocation3] sm:$0xff]  ;;  %s1543_s1 = smov 1  }
   0xa   :  { %v238_v4 = vld [vmem:[#allocation3 + $0x10] sm:$0xff] }
   0xd   :  { %1407 = vmatpush3.bf16.xpose.msk.msra.mxu0 %vm1589_vm1, %v1402_v7  ;;  %v258_v5 = vld [vmem:[#allocation4 + $0x8] sm:$0xff] }
   0xe   :  { %1410 = vmatprep.subr.msk.bf16.mxu0 %vm1589_vm1, %v1408_v13  ;;  %v259_v10 = vld [vmem:[#allocation4 + $0x10] sm:$0xff] }
   0xf   :  { %v260_v26 = vld [vmem:[#allocation4 + $0x18] sm:$0xff] }
  0x15   :  { %1413 = vmatpush3.bf16.xpose.msk.msra.mxu0 %vm1589_vm1, %v1408_v13  ;;  %v257_v13 = vld [vmem:[#allocation4] sm:$0xff] }
  0x16   :  { %1416 = vmatprep.subr.msk.bf16.mxu0 %vm1589_vm1, %v1414_v18 }
  0x1d   :  { %1419 = vmatpush3.bf16.xpose.msk.msra.mxu0 %vm1589_vm1, %v1414_v18 }
  0x1e   :  { %1422 = vmatprep.subr.msk.bf16.mxu0 %vm1589_vm1, %v1420_v21 }
  0x25   :  { %1425 = vmatpush3.bf16.xpose.msk.msra.mxu0 %vm1589_vm1, %v1420_v21  ;;  %v239_v21 = vld [vmem:[#allocation3 + $0x18] sm:$0xff] }
  0x26   :  { %1428 = vmatprep.subr.msk.bf16.mxu0 %vm1589_vm1, %v1426_v24 }
  0x2d   :  { %1431 = vmatpush3.bf16.xpose.msk.msra.mxu0 %vm1589_vm1, %v1426_v24 }
  0x2e   :  { %1434 = vmatprep.subr.msk.bf16.mxu0 %vm1589_vm1, %v1432_v27 }
  0x35   :  { %1437 = vmatpush3.bf16.xpose.msk.msra.mxu0 %vm1589_vm1, %v1432_v27 }
  0x36   :  { %1440 = vmatprep.subr.msk.bf16.mxu0 %vm1589_vm1, %v1438_v30 }
  0x3d   :  { %1443 = vmatpush3.bf16.xpose.msk.msra.mxu0 %vm1589_vm1, %v1438_v30 }
  0x44   :  { %1349 = vmatmul.mubr.msk.f32.vlgmr.msra.gmra.mrb[0].mxu0 %vm74_vm0, %v31_v31 }
  0x45   :  { %1351 = vmatprep.mubr.msk.f32.mxu0 %vm74_vm0, %v32_v32 }
  0x48   :  { %1352 = vmatmul.mubr.msk.f32.gmra.mrb[2].mxu0 %vm74_vm0, %v33_v33 }
  0x83   :  { %v67_v42 = vpop.permute.xlu1 %66 }
  0x84   :  { %v57_v36 = vpop.permute.xlu0 %56 }
  0x87   :  { %v72_v52 = vpop.permute.xlu1 %71 }
  0x88   :  { %v62_v38 = vpop.permute.xlu0 %61 }
 0x117   :  { %v1350_v39 = vpop.f32.mrb[0].mxu0 }
 0x118   :  { %v207_v40 = vadd.f32 %v1350_v39, %v62_v38  ;;  %v201_v41 = vpop.f32.mrb[1].mxu0 }
 0x119   :  { %v202_v43 = vadd.f32 %v201_v41, %v57_v36 }
 0x11a   :  { %v1717_v45 = vmax.f32 %v207_v40, 0.0 }
 0x11b   :  { %v1719_v46 = vmax.f32 %v202_v43, 0.0  ;;  %v1353_v47 = vpop.f32.mrb[2].mxu0 }
 0x11c   :  { %v211_v48 = vpop.f32.mrb[3].mxu0  ;;  %v233_v49 = vmul.f32 %v1715_v44, %v1717_v45  ;;  %v217_v54 = vadd.f32 %v1353_v47, %v72_v52 }
 0x11d   :  { %v212_v50 = vadd.f32 %v211_v48, %v67_v42  ;;  %v232_v51 = vmul.f32 %v1715_v44, %v1719_v46 }
 0x11e   :  { %242 = vadd.xlane.f32.xlu1 %v233_v49  ;;  %v262_v56 = vmul.f32 %v233_v49, %v1717_v45  ;;  %v1731_v58 = vmax.f32 %v217_v54, 0.0 }
 0x11f   :  { %v1725_v53 = vmax.f32 %v212_v50, 0.0  ;;  %240 = vadd.xlane.f32.xlu0 %v232_v51  ;;  %v261_v59 = vmul.f32 %v232_v51, %v1719_v46 }
 0x120   :  { %v235_v60 = vmul.f32 %v1715_v44, %v1731_v58 }
 0x121   :  { %v234_v55 = vmul.f32 %v1715_v44, %v1725_v53 }
 0x122   :  { %v264_v61 = vmul.f32 %v235_v60, %v1731_v58 }
 0x123   :  { %244 = vadd.xlane.f32.xlu1 %v234_v55  ;;  %267 = vadd.xlane.f32.xlu0 %v262_v56  ;;  %v263_v57 = vmul.f32 %v234_v55, %v1725_v53 }
 0x127   :  { %269 = vadd.xlane.f32.xlu1 %v263_v57  ;;  %265 = vadd.xlane.f32.xlu0 %v261_v59 }
 0x12b   :  { %246 = vadd.xlane.f32.xlu0 %v235_v60 }
 0x12f   :  { %271 = vadd.xlane.f32.xlu0 %v264_v61 }
 0x1ab   :  { %v243_v0 = vpop.xlane.xlu1 %242 }
 0x1ac   :  { %v249_v1 = vadd.f32 %v243_v0, %v237_v62  ;;  %v241_v2 = vpop.xlane.xlu0 %240 }
 0x1ad   :  { %v248_v3 = vadd.f32 %v241_v2, %v236_v63 }
 0x1ae   :  { %254 = vst.msk [vmem:[#allocation3 + $0x8] sm:$0xff] %vm21_vm2, %v249_v1  ;;  %v1545_v1 = vmov 1  }
 0x1af   :  { %253 = vst.msk [vmem:[#allocation3] sm:$0xff] %vm21_vm2, %v248_v3  ;;  %1485 = vset.pattern.permute.xlu0 %v1545_v1  ;;  %1486 = vset.pattern.permute.xlu1 %v1545_v1 }
 0x1b0   :  { %v245_v6 = vpop.xlane.xlu1 %244  ;;  %v268_v7 = vpop.xlane.xlu0 %267 }
 0x1b1   :  { %v250_v8 = vadd.f32 %v245_v6, %v238_v4  ;;  %v274_v9 = vadd.f32 %v268_v7, %v258_v5 }
 0x1b3   :  { %255 = vst.msk [vmem:[#allocation3 + $0x10] sm:$0xff] %vm21_vm2, %v250_v8  ;;  %278 = vst.msk [vmem:[#allocation4 + $0x8] sm:$0xff] %vm21_vm2, %v274_v9 }
 0x1b4   :  { %v270_v16 = vpop.xlane.xlu1 %269  ;;  %v266_v17 = vpop.xlane.xlu0 %265 }
 0x1b5   :  { %v275_v18 = vadd.f32 %v270_v16, %v259_v10  ;;  %v273_v19 = vadd.f32 %v266_v17, %v257_v13  ;;  %v293_v20 = vld [vmem:[#allocation3 + $0x8] sm:$0xff] }
 0x1b6   :  { %v1743_v22 = vmul.f32 0.125, %v293_v20  ;;  %v292_v24 = vld [vmem:[#allocation3] sm:$0xff]  ;;  %v1547_v20 = vmov 2  }
 0x1b7   :  { %279 = vst.msk [vmem:[#allocation4 + $0x10] sm:$0xff] %vm21_vm2, %v275_v18  ;;  %277 = vst.msk [vmem:[#allocation4] sm:$0xff] %vm21_vm2, %v273_v19  ;;  %v300_v31 = vmul.f32 0.125, %v292_v24 }
 0x1b8   :  { %v247_v23 = vpop.xlane.xlu0 %246  ;;  %v309_v30 = vmul.f32 %v1743_v22, %v1743_v22 }
 0x1b9   :  { %v251_v25 = vadd.f32 %v247_v23, %v239_v21  ;;  %v308_v41 = vmul.f32 %v300_v31, %v300_v31 }
 0x1ba   :  { %v297_v27 = vld [vmem:[#allocation4 + $0x8] sm:$0xff]  ;;  %v294_v28 = vld [vmem:[#allocation3 + $0x10] sm:$0xff] }
 0x1bb   :  { %256 = vst.msk [vmem:[#allocation3 + $0x18] sm:$0xff] %vm21_vm2, %v251_v25  ;;  %v305_v29 = vmul.f32 0.125, %v297_v27  ;;  %v302_v32 = vmul.f32 0.125, %v294_v28 }
 0x1bc   :  { %v272_v33 = vpop.xlane.xlu0 %271 }
 0x1bd   :  { %v276_v34 = vadd.f32 %v272_v33, %v260_v26  ;;  %v313_v35 = vsub.f32 %v305_v29, %v309_v30  ;;  %v310_v36 = vmul.f32 %v302_v32, %v302_v32  ;;  %v432_v29 = vld [vmem:[%s1964_s2] sm:$0xff]  ;;  %v1548_v30 = vmov 3  }
 0x1be   :  { %v296_v37 = vld [vmem:[#allocation4] sm:$0xff]  ;;  %v298_v38 = vld [vmem:[#allocation4 + $0x10] sm:$0xff]  ;;  %1362 = vmatprep.mubr.msk.f32.mxu1 %vm456_vm4, %v432_v29 }
 0x1bf   :  { %280 = vst.msk [vmem:[#allocation4 + $0x18] sm:$0xff] %vm21_vm2, %v276_v34  ;;  %v317_v39 = vadd.f32 1e-05, %v313_v35  ;;  %v304_v40 = vmul.f32 0.125, %v296_v37  ;;  %v306_v42 = vmul.f32 0.125, %v298_v38 }
 0x1c1   :  { %1505 = vrsqrt.f32 %v317_v39  ;;  %v312_v43 = vsub.f32 %v304_v40, %v308_v41  ;;  %v314_v47 = vsub.f32 %v306_v42, %v310_v36 }
 0x1c2   :  { %v295_v48 = vld [vmem:[#allocation3 + $0x18] sm:$0xff] }
 0x1c3   :  { %v316_v49 = vadd.f32 1e-05, %v312_v43  ;;  %v303_v50 = vmul.f32 0.125, %v295_v48  ;;  %v318_v51 = vadd.f32 1e-05, %v314_v47 }
 0x1c5   :  { %1507 = vrsqrt.f32 %v316_v49  ;;  %v311_v55 = vmul.f32 %v303_v50, %v303_v50 }
 0x1c6   :  { %v299_v52 = vld [vmem:[#allocation4 + $0x18] sm:$0xff]  ;;  %1509 = vrsqrt.f32 %v318_v51 }
 0x1c7   :  { %v307_v54 = vmul.f32 0.125, %v299_v52 }
 0x1c9   :  { %v315_v56 = vsub.f32 %v307_v54, %v311_v55 }
 0x1cb   :  { %v1506_v57 = vpop.eup %1505  ;;  %v319_v59 = vadd.f32 1e-05, %v315_v56 }
 0x1cc   :  { %334 = vrot.lane.b32.xlu0 %v1506_v57, %s1543_s1 }
 0x1cd   :  { %1511 = vrsqrt.f32 %v319_v59 }
 0x1cf   :  { %v1508_v60 = vpop.eup %1507 }
 0x1d0   :  { %332 = vrot.lane.b32.xlu1 %v1508_v60, %s1543_s1  ;;  %v1510_v61 = vpop.eup %1509 }
 0x1d4   :  { %336 = vrot.lane.b32.xlu1 %v1510_v61, %s1543_s1 }
 0x1d7   :  { %v1512_v62 = vpop.eup %1511 }
 0x1d8   :  { %338 = vrot.lane.b32.xlu1 %v1512_v62, %s1543_s1 }
 0x23e   :  { %v335_v63 = vpop.permute.xlu0 %334 }
 0x23f   :  { %v345_v0 = vmul.f32 %v335_v63, %v1630_v14 }
 0x241   :  { %354 = vrot.lane.b32.xlu1 %v345_v0, %s1544_s10 }
 0x242   :  { %v333_v2 = vpop.permute.xlu1 %332 }
 0x243   :  { %v344_v3 = vmul.f32 %v333_v2, %v1618_v11 }
 0x245   :  { %352 = vrot.lane.b32.xlu0 %v344_v3, %s1544_s10 }
 0x246   :  { %v337_v4 = vpop.permute.xlu1 %336 }
 0x247   :  { %v346_v5 = vmul.f32 %v337_v4, %v1623_v12 }
 0x249   :  { %356 = vrot.lane.b32.xlu0 %v346_v5, %s1544_s10 }
 0x24a   :  { %v339_v6 = vpop.permute.xlu1 %338 }
 0x24b   :  { %v347_v7 = vmul.f32 %v339_v6, %v1635_v15 }
 0x24d   :  { %358 = vrot.lane.b32.xlu1 %v347_v7, %s1544_s10 }
 0x2b3   :  { %v355_v8 = vpop.permute.xlu1 %354 }
 0x2b4   :  { %v365_v9 = vmul.f32 %v355_v8, %v1743_v22 }
 0x2b6   :  { %374 = vrot.lane.b32.xlu1 %v365_v9, %s1546_s11 }
 0x2b7   :  { %v353_v10 = vpop.permute.xlu0 %352 }
 0x2b8   :  { %v364_v13 = vmul.f32 %v353_v10, %v300_v31 }
 0x2ba   :  { %372 = vrot.lane.b32.xlu0 %v364_v13, %s1546_s11 }
 0x2bb   :  { %v357_v16 = vpop.permute.xlu0 %356 }
 0x2bc   :  { %v366_v17 = vmul.f32 %v357_v16, %v302_v32 }
 0x2be   :  { %376 = vrot.lane.b32.xlu0 %v366_v17, %s1546_s11  ;;  %v1549_v17 = vmov 4  }
 0x2bf   :  { %v359_v18 = vpop.permute.xlu1 %358 }
 0x2c0   :  { %v367_v19 = vmul.f32 %v359_v18, %v303_v50 }
 0x2c2   :  { %378 = vrot.lane.b32.xlu1 %v367_v19, %s1546_s11  ;;  %389 = vperm.xlu0 %1485, %v344_v3  }
 0x2c6   :  { %393 = vperm.xlu1 %1486, %v345_v0   ;;  %1487 = vset.pattern.permute.xlu0 %v1547_v20 }
 0x2ca   :  { %397 = vperm.xlu1 %1486, %v346_v5  }
 0x2ce   :  { %401 = vperm.xlu1 %1486, %v347_v7  }
 0x2d2   :  { %1488 = vset.pattern.permute.xlu1 %v1547_v20 }
 0x328   :  { %v375_v21 = vpop.permute.xlu1 %374 }
 0x329   :  { %v385_v22 = vsub.f32 %v1630_v14, %v375_v21 }
 0x32b   :  { %415 = vperm.xlu0 %1487, %v385_v22  }
 0x32c   :  { %v373_v23 = vpop.permute.xlu0 %372 }
 0x32d   :  { %v384_v24 = vsub.f32 %v1618_v11, %v373_v23 }
 0x32f   :  { %410 = vperm.xlu1 %1488, %v384_v24  }
 0x330   :  { %v377_v25 = vpop.permute.xlu0 %376 }
 0x331   :  { %v386_v26 = vsub.f32 %v1623_v12, %v377_v25 }
 0x333   :  { %420 = vperm.xlu0 %1487, %v386_v26  }
 0x334   :  { %v379_v27 = vpop.permute.xlu1 %378 }
 0x335   :  { %v387_v28 = vsub.f32 %v1635_v15, %v379_v27 }
 0x337   :  { %425 = vperm.xlu1 %1488, %v387_v28   ;;  %1489 = vset.pattern.permute.xlu0 %v1548_v30 }
 0x338   :  { %438 = vperm.xlu0 %1489, %v1618_v11  }
 0x33b   :  { %1490 = vset.pattern.permute.xlu1 %v1548_v30 }
 0x33c   :  { %443 = vperm.xlu1 %1490, %v1630_v14   ;;  %453 = vperm.xlu0 %1489, %v1635_v15  }
 0x340   :  { %448 = vperm.xlu1 %1490, %v1623_v12   ;;  %1492 = vset.pattern.permute.xlu0 %v1549_v17 }
 0x341   :  { %v390_v33 = vpop.permute.xlu0 %389 }
 0x342   :  { %v404_v36 = vmul.f32 %v390_v33, %v1719_v46  ;;  %v434_v46 = vld [vmem:[%s1964_s2 + $0x10] sm:$0xff] }
 0x344   :  { %1491 = vset.pattern.permute.xlu1 %v1549_v17 }
 0x345   :  { %v394_v31 = vpop.permute.xlu1 %393 }
 0x346   :  { %v405_v37 = vmul.f32 %v394_v31, %v1717_v45  ;;  %v433_v45 = vld [vmem:[%s1964_s2 + $0x8] sm:$0xff] }
 0x349   :  { %v398_v32 = vpop.permute.xlu1 %397 }
 0x34a   :  { %v406_v43 = vmul.f32 %v398_v32, %v1725_v53  ;;  %v435_v53 = vld [vmem:[%s1964_s2 + $0x18] sm:$0xff] }
 0x34d   :  { %v402_v34 = vpop.permute.xlu1 %401 }
 0x34e   :  { %v407_v47 = vmul.f32 %v402_v34, %v1731_v58 }
 0x3aa   :  { %v416_v35 = vpop.permute.xlu0 %415 }
 0x3ab   :  { %v429_v39 = vadd.f32 %v416_v35, %v405_v37 }
 0x3ae   :  { %v411_v38 = vpop.permute.xlu1 %410 }
 0x3af   :  { %v428_v40 = vadd.f32 %v411_v38, %v404_v36 }
 0x3b1   :  { %v1444_v41 = vpack.c.bf16 %v429_v39, %v428_v40 }
 0x3b2   :  { %v421_v42 = vpop.permute.xlu0 %420 }
 0x3b3   :  { %1445 = vmatprep.subr.bf16.mxu1 %v1444_v41  ;;  %v430_v49 = vadd.f32 %v421_v42, %v406_v43 }
 0x3b4   :  { %1447 = vmatpush3.bf16.msra.mxu1 %v1444_v41 }
 0x3b6   :  { %v426_v48 = vpop.permute.xlu1 %425 }
 0x3b7   :  { %v431_v50 = vadd.f32 %v426_v48, %v407_v47  ;;  %v439_v52 = vpop.permute.xlu0 %438 }
 0x3b9   :  { %v1448_v51 = vpack.c.bf16 %v431_v50, %v430_v49 }
 0x3bb   :  { %1449 = vmatprep.subr.bf16.mxu1 %v1448_v51  ;;  %v444_v58 = vpop.permute.xlu1 %443  ;;  %v454_v63 = vpop.permute.xlu0 %453 }
 0x3bc   :  { %1451 = vmatpush3.bf16.msra.mxu1 %v1448_v51 }
 0x3bf   :  { %1363 = vmatmul.mubr.msk.f32.vlgmr.msra.gmra.mrb[0].mxu1 %vm456_vm4, %v433_v45  ;;  %v449_v60 = vpop.permute.xlu1 %448 }
 0x3c0   :  { %1365 = vmatprep.mubr.msk.f32.mxu1 %vm456_vm4, %v434_v46 }
 0x3c3   :  { %1366 = vmatmul.mubr.msk.f32.gmra.mrb[2].mxu1 %vm456_vm4, %v435_v53 }
 0x492   :  { %v1364_v54 = vpop.f32.mrb[0].mxu1 }
 0x493   :  { %v541_v55 = vadd.f32 %v1364_v54, %v444_v58  ;;  %v535_v56 = vpop.f32.mrb[1].mxu1 }
 0x494   :  { %v536_v57 = vadd.f32 %v535_v56, %v439_v52 }
 0x495   :  { %v1794_v59 = vmax.f32 %v541_v55, 0.0 }
 0x496   :  { %v1796_v61 = vmax.f32 %v536_v57, 0.0  ;;  %v1367_v62 = vpop.f32.mrb[2].mxu1 }
 0x497   :  { %v545_v0 = vpop.f32.mrb[3].mxu1  ;;  %v559_v1 = vmul.f32 %v1715_v44, %v1794_v59  ;;  %v551_v2 = vadd.f32 %v1367_v62, %v454_v63 }
 0x498   :  { %v546_v3 = vadd.f32 %v545_v0, %v449_v60  ;;  %v558_v4 = vmul.f32 %v1715_v44, %v1796_v61  ;;  %v1550_v60 = vmov 5  }
 0x499   :  { %564 = vadd.xlane.f32.xlu0 %v559_v1  ;;  %v1805_v7 = vmax.f32 %v551_v2, 0.0  ;;  %v571_v8 = vmul.f32 %v559_v1, %v1794_v59 }
 0x49a   :  { %562 = vadd.xlane.f32.xlu1 %v558_v4  ;;  %v570_v5 = vmul.f32 %v558_v4, %v1796_v61  ;;  %v1803_v6 = vmax.f32 %v546_v3, 0.0 }
 0x49b   :  { %v561_v10 = vmul.f32 %v1715_v44, %v1805_v7 }
 0x49c   :  { %v560_v9 = vmul.f32 %v1715_v44, %v1803_v6 }
 0x49d   :  { %574 = vadd.xlane.f32.xlu0 %v570_v5  ;;  %v573_v16 = vmul.f32 %v561_v10, %v1805_v7 }
 0x49e   :  { %576 = vadd.xlane.f32.xlu1 %v571_v8  ;;  %v572_v13 = vmul.f32 %v560_v9, %v1803_v6  ;;  %v1256_v8 = vld [vmem:[%s1964_s2 + $0x20] sm:$0xff] }
 0x49f   :  { %1376 = vmatprep.mubr.msk.f32.mxu1 %vm456_vm4, %v1256_v8 }
 0x4a1   :  { %566 = vadd.xlane.f32.xlu0 %v560_v9  ;;  %v1551_v9 = vmov 6  }
 0x4a2   :  { %568 = vadd.xlane.f32.xlu1 %v561_v10 }
 0x4a5   :  { %578 = vadd.xlane.f32.xlu0 %v572_v13 }
 0x4a6   :  { %580 = vadd.xlane.f32.xlu1 %v573_v16 }
 0x526   :  { %v565_v18 = vpop.xlane.xlu0 %564 }
 0x527   :  { %v563_v19 = vpop.xlane.xlu1 %562  ;;  %v583_v20 = vmul.f32 0.125, %v565_v18 }
 0x528   :  { %v582_v21 = vmul.f32 0.125, %v563_v19 }
 0x529   :  { %v591_v26 = vmul.f32 %v583_v20, %v583_v20 }
 0x52a   :  { %v590_v22 = vmul.f32 %v582_v21, %v582_v21  ;;  %v575_v23 = vpop.xlane.xlu0 %574 }
 0x52b   :  { %v586_v24 = vmul.f32 0.125, %v575_v23  ;;  %v577_v25 = vpop.xlane.xlu1 %576 }
 0x52c   :  { %v587_v27 = vmul.f32 0.125, %v577_v25 }
 0x52d   :  { %v594_v28 = vsub.f32 %v586_v24, %v590_v22 }
 0x52e   :  { %v595_v29 = vsub.f32 %v587_v27, %v591_v26  ;;  %v567_v30 = vpop.xlane.xlu0 %566 }
 0x52f   :  { %v598_v31 = vadd.f32 1e-05, %v594_v28  ;;  %v584_v32 = vmul.f32 0.125, %v567_v30  ;;  %v569_v33 = vpop.xlane.xlu1 %568 }
 0x530   :  { %v599_v34 = vadd.f32 1e-05, %v595_v29  ;;  %v585_v35 = vmul.f32 0.125, %v569_v33 }
 0x531   :  { %1513 = vrsqrt.f32 %v598_v31  ;;  %v592_v37 = vmul.f32 %v584_v32, %v584_v32 }
 0x532   :  { %1515 = vrsqrt.f32 %v599_v34  ;;  %v579_v36 = vpop.xlane.xlu0 %578  ;;  %v593_v40 = vmul.f32 %v585_v35, %v585_v35 }
 0x533   :  { %v588_v38 = vmul.f32 0.125, %v579_v36  ;;  %v581_v39 = vpop.xlane.xlu1 %580 }
 0x534   :  { %v589_v41 = vmul.f32 0.125, %v581_v39 }
 0x535   :  { %v596_v42 = vsub.f32 %v588_v38, %v592_v37 }
 0x536   :  { %v597_v43 = vsub.f32 %v589_v41, %v593_v40 }
 0x537   :  { %v600_v47 = vadd.f32 1e-05, %v596_v42 }
 0x538   :  { %v601_v48 = vadd.f32 1e-05, %v597_v43 }
 0x539   :  { %1517 = vrsqrt.f32 %v600_v47 }
 0x53a   :  { %1519 = vrsqrt.f32 %v601_v48 }
 0x53b   :  { %v1514_v49 = vpop.eup %1513 }
 0x53c   :  { %v1516_v50 = vpop.eup %1515  ;;  %v606_v51 = vmul.f32 %v1514_v49, %v1618_v11 }
 0x53d   :  { %v607_v45 = vmul.f32 %v1516_v50, %v1630_v14 }
 0x53e   :  { %v610_v46 = vmul.f32 %v606_v51, %v582_v21 }
 0x53f   :  { %v611_v53 = vmul.f32 %v607_v45, %v583_v20 }
 0x540   :  { %618 = vrot.lane.b32.xlu0 %v610_v46, %s1543_s1 }
 0x541   :  { %620 = vrot.lane.b32.xlu1 %v611_v53, %s1543_s1 }
 0x543   :  { %v1518_v58 = vpop.eup %1517 }
 0x544   :  { %v1520_v52 = vpop.eup %1519  ;;  %v608_v54 = vmul.f32 %v1518_v58, %v1623_v12 }
 0x545   :  { %v609_v55 = vmul.f32 %v1520_v52, %v1635_v15 }
 0x546   :  { %v612_v56 = vmul.f32 %v608_v54, %v584_v32 }
 0x547   :  { %v613_v57 = vmul.f32 %v609_v55, %v585_v35 }
 0x548   :  { %622 = vrot.lane.b32.xlu1 %v612_v56, %s1543_s1 }
 0x549   :  { %624 = vrot.lane.b32.xlu0 %v613_v57, %s1543_s1 }
 0x54c   :  { %636 = vperm.xlu1 %1491, %v606_v51  }
 0x54d   :  { %641 = vperm.xlu0 %1492, %v607_v45  }
 0x550   :  { %651 = vperm.xlu1 %1491, %v609_v55   ;;  %v1552_v55 = vmov 7  }
 0x551   :  { %646 = vperm.xlu0 %1492, %v608_v54  }
 0x554   :  { %1493 = vset.pattern.permute.xlu1 %v1550_v60 }
 0x555   :  { %1494 = vset.pattern.permute.xlu0 %v1550_v60 }
 0x5b2   :  { %v619_v0 = vpop.permute.xlu0 %618 }
 0x5b3   :  { %v621_v62 = vpop.permute.xlu1 %620  ;;  %v630_v1 = vsub.f32 %v1618_v11, %v619_v0 }
 0x5b4   :  { %v631_v63 = vsub.f32 %v1630_v14, %v621_v62 }
 0x5b6   :  { %665 = vperm.xlu1 %1493, %v631_v63  }
 0x5ba   :  { %v623_v2 = vpop.permute.xlu1 %622  ;;  %660 = vperm.xlu1 %1493, %v630_v1  }
 0x5bb   :  { %v632_v3 = vsub.f32 %v1623_v12, %v623_v2  ;;  %v625_v4 = vpop.permute.xlu0 %624 }
 0x5bc   :  { %v633_v5 = vsub.f32 %v1635_v15, %v625_v4 }
 0x5bd   :  { %670 = vperm.xlu0 %1494, %v632_v3  }
 0x5be   :  { %675 = vperm.xlu1 %1493, %v633_v5  }
 0x5c1   :  { %1496 = vset.pattern.permute.xlu0 %v1551_v9 }
 0x5c2   :  { %1495 = vset.pattern.permute.xlu1 %v1551_v9  ;;  %692 = vperm.xlu0 %1496, %v1630_v14  }
 0x5c3   :  { %688 = vperm.xlu1 %1495, %v1618_v11  }
 0x5c6   :  { %1497 = vset.pattern.permute.xlu0 %v1552_v55 }
 0x5c7   :  { %696 = vperm.xlu1 %1495, %v1623_v12  }
 0x5cb   :  { %700 = vperm.xlu1 %1495, %v1635_v15   ;;  %v637_v10 = vpop.permute.xlu1 %636 }
 0x5cc   :  { %v642_v16 = vpop.permute.xlu0 %641  ;;  %v654_v18 = vmul.f32 %v637_v10, %v1796_v61  ;;  %v1258_v61 = vld [vmem:[%s1964_s2 + $0x30] sm:$0xff] }
 0x5cd   :  { %v655_v19 = vmul.f32 %v642_v16, %v1794_v59  ;;  %v1257_v59 = vld [vmem:[%s1964_s2 + $0x28] sm:$0xff] }
 0x5cf   :  { %v652_v13 = vpop.permute.xlu1 %651  ;;  %1498 = vset.pattern.permute.xlu1 %v1552_v55 }
 0x5d0   :  { %v647_v20 = vpop.permute.xlu0 %646  ;;  %v657_v25 = vmul.f32 %v652_v13, %v1805_v7 }
 0x5d1   :  { %v656_v24 = vmul.f32 %v647_v20, %v1803_v6  ;;  %v1259_v6 = vld [vmem:[%s1964_s2 + $0x38] sm:$0xff] }
 0x635   :  { %v666_v17 = vpop.permute.xlu1 %665 }
 0x636   :  { %v679_v22 = vadd.f32 %v666_v17, %v655_v19 }
 0x639   :  { %v661_v21 = vpop.permute.xlu1 %660 }
 0x63a   :  { %v678_v23 = vadd.f32 %v661_v21, %v654_v18 }
 0x63c   :  { %v1452_v26 = vpack.c.bf16 %v679_v22, %v678_v23  ;;  %v671_v27 = vpop.permute.xlu0 %670 }
 0x63d   :  { %v680_v28 = vadd.f32 %v671_v27, %v656_v24  ;;  %v676_v29 = vpop.permute.xlu1 %675 }
 0x63e   :  { %v681_v30 = vadd.f32 %v676_v29, %v657_v25  ;;  %1453 = vmatprep.subr.bf16.mxu1 %v1452_v26 }
 0x63f   :  { %1455 = vmatpush3.bf16.msra.mxu1 %v1452_v26 }
 0x640   :  { %v1456_v31 = vpack.c.bf16 %v681_v30, %v680_v28 }
 0x641   :  { %v693_v32 = vpop.permute.xlu0 %692 }
 0x642   :  { %1457 = vmatprep.subr.bf16.mxu1 %v1456_v31  ;;  %v689_v7 = vpop.permute.xlu1 %688 }
 0x643   :  { %1459 = vmatpush3.bf16.msra.mxu1 %v1456_v31 }
 0x646   :  { %1377 = vmatmul.mubr.msk.f32.vlgmr.msra.gmra.mrb[4].mxu1 %vm456_vm4, %v1257_v59  ;;  %v697_v37 = vpop.permute.xlu1 %696 }
 0x647   :  { %1379 = vmatprep.mubr.msk.f32.mxu1 %vm456_vm4, %v1258_v61 }
 0x64a   :  { %1380 = vmatmul.mubr.msk.f32.gmra.mrb[6].mxu1 %vm456_vm4, %v1259_v6  ;;  %v701_v49 = vpop.permute.xlu1 %700 }
 0x719   :  { %v1378_v33 = vpop.f32.mrb[4].mxu1 }
 0x71a   :  { %v787_v34 = vadd.f32 %v1378_v33, %v693_v32  ;;  %v781_v35 = vpop.f32.mrb[5].mxu1 }
 0x71b   :  { %v782_v36 = vadd.f32 %v781_v35, %v689_v7 }
 0x71c   :  { %v1850_v38 = vmax.f32 %v787_v34, 0.0 }
 0x71d   :  { %v1852_v39 = vmax.f32 %v782_v36, 0.0  ;;  %v1381_v40 = vpop.f32.mrb[6].mxu1  ;;  %v1553_v36 = vmov 8  }
 0x71e   :  { %v791_v41 = vpop.f32.mrb[7].mxu1  ;;  %v805_v42 = vmul.f32 %v1715_v44, %v1850_v38  ;;  %v797_v50 = vadd.f32 %v1381_v40, %v701_v49 }
 0x71f   :  { %v792_v43 = vadd.f32 %v791_v41, %v697_v37  ;;  %v804_v47 = vmul.f32 %v1715_v44, %v1852_v39 }
 0x720   :  { %810 = vadd.xlane.f32.xlu1 %v805_v42  ;;  %v817_v45 = vmul.f32 %v805_v42, %v1850_v38  ;;  %v1863_v46 = vmax.f32 %v797_v50, 0.0 }
 0x721   :  { %v1858_v48 = vmax.f32 %v792_v43, 0.0  ;;  %808 = vadd.xlane.f32.xlu0 %v804_v47  ;;  %v816_v58 = vmul.f32 %v804_v47, %v1852_v39 }
 0x722   :  { %v807_v52 = vmul.f32 %v1715_v44, %v1863_v46 }
 0x723   :  { %v806_v51 = vmul.f32 %v1715_v44, %v1858_v48 }
 0x724   :  { %v819_v54 = vmul.f32 %v807_v52, %v1863_v46 }
 0x725   :  { %812 = vadd.xlane.f32.xlu1 %v806_v51  ;;  %822 = vadd.xlane.f32.xlu0 %v817_v45  ;;  %v818_v53 = vmul.f32 %v806_v51, %v1858_v48  ;;  %v1264_v45 = vld [vmem:[%s1964_s2 + $0x40] sm:$0xff] }
 0x726   :  { %1390 = vmatprep.mubr.msk.f32.mxu1 %vm456_vm4, %v1264_v45 }
 0x729   :  { %824 = vadd.xlane.f32.xlu1 %v818_v53  ;;  %820 = vadd.xlane.f32.xlu0 %v816_v58  ;;  %v1554_v53 = vmov 9  }
 0x72d   :  { %814 = vadd.xlane.f32.xlu0 %v807_v52 }
 0x731   :  { %826 = vadd.xlane.f32.xlu0 %v819_v54 }
 0x7ad   :  { %v811_v56 = vpop.xlane.xlu1 %810 }
 0x7ae   :  { %v809_v57 = vpop.xlane.xlu0 %808  ;;  %v829_v60 = vmul.f32 0.125, %v811_v56 }
 0x7af   :  { %v828_v62 = vmul.f32 0.125, %v809_v57 }
 0x7b0   :  { %v837_v1 = vmul.f32 %v829_v60, %v829_v60 }
 0x7b1   :  { %v836_v5 = vmul.f32 %v828_v62, %v828_v62 }
 0x7b2   :  { %v813_v63 = vpop.xlane.xlu1 %812  ;;  %v823_v0 = vpop.xlane.xlu0 %822 }
 0x7b3   :  { %v830_v2 = vmul.f32 0.125, %v813_v63  ;;  %v833_v3 = vmul.f32 0.125, %v823_v0 }
 0x7b5   :  { %v841_v4 = vsub.f32 %v833_v3, %v837_v1  ;;  %v838_v10 = vmul.f32 %v830_v2, %v830_v2 }
 0x7b6   :  { %v825_v8 = vpop.xlane.xlu1 %824  ;;  %v821_v9 = vpop.xlane.xlu0 %820 }
 0x7b7   :  { %v845_v13 = vadd.f32 1e-05, %v841_v4  ;;  %v834_v16 = vmul.f32 0.125, %v825_v8  ;;  %v832_v17 = vmul.f32 0.125, %v821_v9 }
 0x7b9   :  { %1521 = vrsqrt.f32 %v845_v13  ;;  %v842_v18 = vsub.f32 %v834_v16, %v838_v10  ;;  %v840_v19 = vsub.f32 %v832_v17, %v836_v5 }
 0x7ba   :  { %v815_v20 = vpop.xlane.xlu0 %814 }
 0x7bb   :  { %v846_v21 = vadd.f32 1e-05, %v842_v18  ;;  %v844_v22 = vadd.f32 1e-05, %v840_v19  ;;  %v831_v23 = vmul.f32 0.125, %v815_v20 }
 0x7bd   :  { %1523 = vrsqrt.f32 %v846_v21  ;;  %v839_v25 = vmul.f32 %v831_v23, %v831_v23 }
 0x7be   :  { %1525 = vrsqrt.f32 %v844_v22  ;;  %v827_v24 = vpop.xlane.xlu0 %826 }
 0x7bf   :  { %v835_v26 = vmul.f32 0.125, %v827_v24 }
 0x7c1   :  { %v843_v27 = vsub.f32 %v835_v26, %v839_v25 }
 0x7c3   :  { %v1522_v28 = vpop.eup %1521  ;;  %v847_v29 = vadd.f32 1e-05, %v843_v27 }
 0x7c4   :  { %v853_v30 = vmul.f32 %v1522_v28, %v1630_v14 }
 0x7c5   :  { %1527 = vrsqrt.f32 %v847_v29 }
 0x7c6   :  { %v857_v31 = vmul.f32 %v853_v30, %v829_v60 }
 0x7c7   :  { %v1524_v59 = vpop.eup %1523 }
 0x7c8   :  { %v1526_v61 = vpop.eup %1525  ;;  %866 = vrot.lane.b32.xlu0 %v857_v31, %s1543_s1  ;;  %v854_v32 = vmul.f32 %v1524_v59, %v1623_v12 }
 0x7c9   :  { %v852_v6 = vmul.f32 %v1526_v61, %v1618_v11 }
 0x7ca   :  { %v858_v34 = vmul.f32 %v854_v32, %v830_v2 }
 0x7cb   :  { %v856_v7 = vmul.f32 %v852_v6, %v828_v62 }
 0x7cc   :  { %882 = vperm.xlu0 %1497, %v852_v6  }
 0x7cd   :  { %864 = vrot.lane.b32.xlu1 %v856_v7, %s1543_s1 }
 0x7cf   :  { %v1528_v33 = vpop.eup %1527 }
 0x7d0   :  { %v855_v35 = vmul.f32 %v1528_v33, %v1635_v15  ;;  %1499 = vset.pattern.permute.xlu0 %v1553_v36 }
 0x7d1   :  { %868 = vrot.lane.b32.xlu1 %v858_v34, %s1543_s1 }
 0x7d2   :  { %v859_v37 = vmul.f32 %v855_v35, %v831_v23 }
 0x7d5   :  { %870 = vrot.lane.b32.xlu1 %v859_v37, %s1543_s1 }
 0x7d9   :  { %887 = vperm.xlu1 %1498, %v853_v30  }
 0x7dd   :  { %892 = vperm.xlu1 %1498, %v854_v32  }
 0x7e1   :  { %897 = vperm.xlu1 %1498, %v855_v35  }
 0x7e5   :  { %1500 = vset.pattern.permute.xlu1 %v1553_v36 }
 0x83a   :  { %v867_v40 = vpop.permute.xlu0 %866 }
 0x83b   :  { %v877_v41 = vsub.f32 %v1630_v14, %v867_v40 }
 0x83d   :  { %911 = vperm.xlu0 %1499, %v877_v41  }
 0x83f   :  { %v865_v42 = vpop.permute.xlu1 %864 }
 0x840   :  { %v876_v43 = vsub.f32 %v1618_v11, %v865_v42 }
 0x842   :  { %906 = vperm.xlu1 %1500, %v876_v43  }
 0x843   :  { %v869_v47 = vpop.permute.xlu1 %868 }
 0x844   :  { %v878_v49 = vsub.f32 %v1623_v12, %v869_v47 }
 0x846   :  { %916 = vperm.xlu0 %1499, %v878_v49  }
 0x847   :  { %v871_v50 = vpop.permute.xlu1 %870 }
 0x848   :  { %v879_v51 = vsub.f32 %v1635_v15, %v871_v50 }
 0x84a   :  { %921 = vperm.xlu1 %1500, %v879_v51   ;;  %1501 = vset.pattern.permute.xlu0 %v1554_v53 }
 0x84b   :  { %934 = vperm.xlu0 %1501, %v1618_v11   ;;  %v883_v54 = vpop.permute.xlu0 %882 }
 0x84c   :  { %v900_v57 = vmul.f32 %v883_v54, %v1852_v39  ;;  %v1266_v39 = vld [vmem:[%s1964_s2 + $0x50] sm:$0xff] }
 0x84e   :  { %1502 = vset.pattern.permute.xlu1 %v1554_v53 }
 0x84f   :  { %938 = vperm.xlu1 %1502, %v1630_v14   ;;  %946 = vperm.xlu0 %1501, %v1635_v15  }
 0x853   :  { %942 = vperm.xlu1 %1502, %v1623_v12  }
 0x858   :  { %v888_v58 = vpop.permute.xlu1 %887 }
 0x859   :  { %v901_v60 = vmul.f32 %v888_v58, %v1850_v38  ;;  %v1265_v38 = vld [vmem:[%s1964_s2 + $0x48] sm:$0xff] }
 0x85c   :  { %v893_v52 = vpop.permute.xlu1 %892 }
 0x85d   :  { %v902_v11 = vmul.f32 %v893_v52, %v1858_v48  ;;  %v1267_v48 = vld [vmem:[%s1964_s2 + $0x58] sm:$0xff] }
 0x860   :  { %v898_v55 = vpop.permute.xlu1 %897 }
 0x861   :  { %v903_v12 = vmul.f32 %v898_v55, %v1863_v46 }
 0x8bc   :  { %v912_v56 = vpop.permute.xlu0 %911 }
 0x8bd   :  { %v925_v63 = vadd.f32 %v912_v56, %v901_v60 }
 0x8c1   :  { %v907_v62 = vpop.permute.xlu1 %906 }
 0x8c2   :  { %v924_v0 = vadd.f32 %v907_v62, %v900_v57 }
 0x8c4   :  { %v1460_v1 = vpack.c.bf16 %v925_v63, %v924_v0 }
 0x8c5   :  { %v917_v14 = vpop.permute.xlu0 %916 }
 0x8c6   :  { %1461 = vmatprep.subr.bf16.mxu1 %v1460_v1  ;;  %v926_v2 = vadd.f32 %v917_v14, %v902_v11  ;;  %v1537_v14 = vld [vmem:[%s1963_s3 + $0x8] sm:$0xff] }
 0x8c7   :  { %1463 = vmatpush3.bf16.msra.mxu1 %v1460_v1 }
 0x8c9   :  { %v922_v15 = vpop.permute.xlu1 %921 }
 0x8ca   :  { %v927_v3 = vadd.f32 %v922_v15, %v903_v12  ;;  %v935_v46 = vpop.permute.xlu0 %934  ;;  %v1538_v12 = vld [vmem:[%s1963_s3] sm:$0xff] }
 0x8cc   :  { %v1464_v4 = vpack.c.bf16 %v927_v3, %v926_v2 }
 0x8ce   :  { %1465 = vmatprep.subr.bf16.mxu1 %v1464_v4  ;;  %v939_v5 = vpop.permute.xlu1 %938  ;;  %v947_v17 = vpop.permute.xlu0 %946 }
 0x8cf   :  { %1467 = vmatpush3.bf16.msra.mxu1 %v1464_v4  ;;  %v1555_v4 = vmov 12  }
 0x8d0   :  { %1503 = vset.pattern.permute.xlu0 %v1555_v4  ;;  %1504 = vset.pattern.permute.xlu1 %v1555_v4 }
 0x8d2   :  { %1391 = vmatmul.mubr.msk.f32.vlgmr.msra.gmra.mrb[8].mxu1 %vm456_vm4, %v1265_v38  ;;  %v943_v20 = vpop.permute.xlu1 %942 }
 0x8d3   :  { %1393 = vmatprep.mubr.msk.f32.mxu1 %vm456_vm4, %v1266_v39 }
 0x8d6   :  { %1394 = vmatmul.mubr.msk.f32.gmra.mrb[10].mxu1 %vm456_vm4, %v1267_v48  ;;  %v1539_v48 = vld [vmem:[%s1963_s3 + $0x10] sm:$0xff] }
 0x9a5   :  { %v1392_v8 = vpop.f32.mrb[8].mxu1 }
 0x9a6   :  { %v1033_v9 = vadd.f32 %v1392_v8, %v939_v5  ;;  %v1027_v10 = vpop.f32.mrb[9].mxu1  ;;  %v1540_v5 = vld [vmem:[%s1963_s3 + $0x18] sm:$0xff] }
 0x9a7   :  { %v1028_v13 = vadd.f32 %v1027_v10, %v935_v46 }
 0x9a8   :  { %v1906_v16 = vmax.f32 %v1033_v9, 0.0 }
 0x9a9   :  { %v1908_v18 = vmax.f32 %v1028_v13, 0.0  ;;  %v1395_v19 = vpop.f32.mrb[10].mxu1 }
 0x9aa   :  { %v1037_v21 = vpop.f32.mrb[11].mxu1  ;;  %v1051_v22 = vmul.f32 %v1715_v44, %v1906_v16  ;;  %v1043_v23 = vadd.f32 %v1395_v19, %v947_v17 }
 0x9ab   :  { %v1038_v24 = vadd.f32 %v1037_v21, %v943_v20  ;;  %v1050_v25 = vmul.f32 %v1715_v44, %v1908_v18 }
 0x9ac   :  { %1056 = vadd.xlane.f32.xlu0 %v1051_v22  ;;  %v1063_v27 = vmul.f32 %v1051_v22, %v1906_v16  ;;  %v1917_v28 = vmax.f32 %v1043_v23, 0.0 }
 0x9ad   :  { %1054 = vadd.xlane.f32.xlu1 %v1050_v25  ;;  %v1914_v26 = vmax.f32 %v1038_v24, 0.0  ;;  %v1062_v29 = vmul.f32 %v1050_v25, %v1908_v18 }
 0x9ae   :  { %v1053_v31 = vmul.f32 %v1715_v44, %v1917_v28 }
 0x9af   :  { %v1052_v30 = vmul.f32 %v1715_v44, %v1914_v26 }
 0x9b0   :  { %1068 = vadd.xlane.f32.xlu0 %v1063_v27  ;;  %v1065_v61 = vmul.f32 %v1053_v31, %v1917_v28 }
 0x9b1   :  { %1066 = vadd.xlane.f32.xlu1 %v1062_v29  ;;  %v1064_v59 = vmul.f32 %v1052_v30, %v1914_v26  ;;  %v1126_v29 = vld [vmem:[%s1963_s3] sm:$0x1] }
 0x9b4   :  { %1058 = vadd.xlane.f32.xlu0 %v1052_v30 }
 0x9b5   :  { %1060 = vadd.xlane.f32.xlu1 %v1053_v31 }
 0x9b8   :  { %1070 = vadd.xlane.f32.xlu0 %v1064_v59 }
 0x9b9   :  { %1072 = vadd.xlane.f32.xlu1 %v1065_v61 }
 0xa39   :  { %v1057_v6 = vpop.xlane.xlu0 %1056 }
 0xa3a   :  { %v1075_v7 = vmul.f32 0.125, %v1057_v6  ;;  %v1055_v32 = vpop.xlane.xlu1 %1054 }
 0xa3b   :  { %v1074_v33 = vmul.f32 0.125, %v1055_v32 }
 0xa3c   :  { %v1083_v35 = vmul.f32 %v1075_v7, %v1075_v7 }
 0xa3d   :  { %v1069_v34 = vpop.xlane.xlu0 %1068  ;;  %v1082_v40 = vmul.f32 %v1074_v33, %v1074_v33 }
 0xa3e   :  { %v1079_v36 = vmul.f32 0.125, %v1069_v34  ;;  %v1067_v37 = vpop.xlane.xlu1 %1066 }
 0xa3f   :  { %v1078_v41 = vmul.f32 0.125, %v1067_v37 }
 0xa40   :  { %v1087_v42 = vsub.f32 %v1079_v36, %v1083_v35 }
 0xa41   :  { %v1086_v44 = vsub.f32 %v1078_v41, %v1082_v40  ;;  %v1059_v43 = vpop.xlane.xlu0 %1058 }
 0xa42   :  { %v1091_v47 = vadd.f32 1e-05, %v1087_v42  ;;  %v1076_v49 = vmul.f32 0.125, %v1059_v43  ;;  %v1061_v50 = vpop.xlane.xlu1 %1060 }
 0xa43   :  { %v1090_v51 = vadd.f32 1e-05, %v1086_v44  ;;  %v1077_v45 = vmul.f32 0.125, %v1061_v50 }
 0xa44   :  { %1529 = vrsqrt.f32 %v1091_v47  ;;  %v1084_v58 = vmul.f32 %v1076_v49, %v1076_v49 }
 0xa45   :  { %1531 = vrsqrt.f32 %v1090_v51  ;;  %v1071_v53 = vpop.xlane.xlu0 %1070  ;;  %v1085_v55 = vmul.f32 %v1077_v45, %v1077_v45 }
 0xa46   :  { %v1080_v52 = vmul.f32 0.125, %v1071_v53  ;;  %v1073_v54 = vpop.xlane.xlu1 %1072 }
 0xa47   :  { %v1081_v56 = vmul.f32 0.125, %v1073_v54 }
 0xa48   :  { %v1088_v57 = vsub.f32 %v1080_v52, %v1084_v58 }
 0xa49   :  { %v1089_v60 = vsub.f32 %v1081_v56, %v1085_v55 }
 0xa4a   :  { %v1092_v62 = vadd.f32 1e-05, %v1088_v57 }
 0xa4b   :  { %v1093_v63 = vadd.f32 1e-05, %v1089_v60 }
 0xa4c   :  { %1533 = vrsqrt.f32 %v1092_v62 }
 0xa4d   :  { %1535 = vrsqrt.f32 %v1093_v63 }
 0xa4e   :  { %v1530_v0 = vpop.eup %1529 }
 0xa4f   :  { %v1532_v1 = vpop.eup %1531  ;;  %v1099_v11 = vmul.f32 %v1537_v14, %v1530_v0 }
 0xa50   :  { %v1098_v15 = vmul.f32 %v1538_v12, %v1532_v1 }
 0xa51   :  { %v1103_v2 = vmul.f32 %v1099_v11, %v1075_v7 }
 0xa52   :  { %v1102_v3 = vmul.f32 %v1098_v15, %v1074_v33 }
 0xa53   :  { %1112 = vrot.lane.b32.xlu1 %v1103_v2, %s1543_s1 }
 0xa54   :  { %1110 = vrot.lane.b32.xlu0 %v1102_v3, %s1543_s1 }
 0xa56   :  { %v1534_v38 = vpop.eup %1533 }
 0xa57   :  { %v1536_v39 = vpop.eup %1535  ;;  %v1100_v46 = vmul.f32 %v1539_v48, %v1534_v38 }
 0xa58   :  { %v1101_v8 = vmul.f32 %v1540_v5, %v1536_v39 }
 0xa59   :  { %v1104_v9 = vmul.f32 %v1100_v46, %v1076_v49 }
 0xa5a   :  { %v1105_v10 = vmul.f32 %v1101_v8, %v1077_v45 }
 0xa5b   :  { %1114 = vrot.lane.b32.xlu1 %v1104_v9, %s1543_s1 }
 0xa5c   :  { %1116 = vrot.lane.b32.xlu0 %v1105_v10, %s1543_s1 }
 0xa5f   :  { %1131 = vrot.lane.b32.xlu1 %v1098_v15, %s1546_s11 }
 0xa60   :  { %1133 = vrot.lane.b32.xlu0 %v1099_v11, %s1546_s11 }
 0xac5   :  { %v1113_v13 = vpop.permute.xlu1 %1112 }
 0xac6   :  { %v1123_v17 = vsub.f32 %v1537_v14, %v1113_v13  ;;  %v1111_v19 = vpop.permute.xlu0 %1110 }
 0xac7   :  { %v1122_v20 = vsub.f32 %v1538_v12, %v1111_v19 }
 0xac8   :  { %1153 = vrot.lane.b32.xlu0 %v1123_v17, %s1543_s1 }
 0xac9   :  { %1151 = vrot.lane.b32.xlu1 %v1122_v20, %s1543_s1 }
 0xacc   :  { %1135 = vrot.lane.b32.xlu0 %v1100_v46, %s1546_s11 }
 0xacd   :  { %v1115_v21 = vpop.permute.xlu1 %1114 }
 0xace   :  { %v1124_v22 = vsub.f32 %v1539_v48, %v1115_v21  ;;  %v1117_v23 = vpop.permute.xlu0 %1116 }
 0xacf   :  { %v1125_v25 = vsub.f32 %v1540_v5, %v1117_v23 }
 0xad0   :  { %1137 = vrot.lane.b32.xlu0 %v1101_v8, %s1546_s11  ;;  %1155 = vrot.lane.b32.xlu1 %v1124_v22, %s1543_s1 }
 0xad1   :  { %v1132_v24 = vpop.permute.xlu1 %1131 }
 0xad2   :  { %v1143_v27 = vmul.f32 %v1538_v12, %v1132_v24  ;;  %v1134_v30 = vpop.permute.xlu0 %1133 }
 0xad3   :  { %v1144_v31 = vmul.f32 %v1537_v14, %v1134_v30 }
 0xad4   :  { %1188 = vperm.xlu0 %1503, %v1143_v27   ;;  %1157 = vrot.lane.b32.xlu1 %v1125_v25, %s1543_s1 }
 0xad8   :  { %1182 = vrot.lane.b32.xlu1 %v1126_v29, %s1544_s10 }
 0xadc   :  { %1193 = vperm.xlu1 %1504, %v1144_v31  }
 0xb3a   :  { %v1154_v59 = vpop.permute.xlu0 %1153 }
 0xb3b   :  { %v1152_v61 = vpop.permute.xlu1 %1151  ;;  %v1164_v7 = vmul.f32 %v1537_v14, %v1154_v59 }
 0xb3c   :  { %v1163_v32 = vmul.f32 %v1538_v12, %v1152_v61 }
 0xb3d   :  { %v1169_v36 = vsel %vm1167_vm5, %v1164_v7, 0.0 }
 0xb3e   :  { %v1136_v6 = vpop.permute.xlu0 %1135  ;;  %v1168_v37 = vsel %vm1167_vm5, %v1163_v32, 0.0 }
 0xb3f   :  { %v1145_v33 = vmul.f32 %v1539_v48, %v1136_v6  ;;  %v1170_v44 = vadd.f32 %v1169_v36, %v1168_v37 }
 0xb41   :  { %1198 = vperm.xlu1 %1504, %v1145_v33  }
 0xb42   :  { %v1156_v34 = vpop.permute.xlu1 %1155  ;;  %v1138_v35 = vpop.permute.xlu0 %1137 }
 0xb43   :  { %v1165_v40 = vmul.f32 %v1539_v48, %v1156_v34  ;;  %v1146_v41 = vmul.f32 %v1540_v5, %v1138_v35 }
 0xb45   :  { %v1171_v42 = vsel %vm1167_vm5, %v1165_v40, 0.0  ;;  %1203 = vperm.xlu0 %1503, %v1146_v41  }
 0xb46   :  { %v1158_v43 = vpop.permute.xlu1 %1157  ;;  %v1172_v49 = vadd.f32 %v1171_v42, %v1170_v44 }
 0xb47   :  { %v1166_v47 = vmul.f32 %v1540_v5, %v1158_v43 }
 0xb49   :  { %v1173_v50 = vsel %vm1167_vm5, %v1166_v47, 0.0 }
 0xb4a   :  { %v1174_v51 = vadd.f32 %v1173_v50, %v1172_v49  ;;  %v1183_v55 = vpop.permute.xlu1 %1182 }
 0xb4c   :  { %v1175_v45 = vrot.slane %v1174_v51, 4 }
 0xb4e   :  { %v1176_v53 = vadd.f32 %v1175_v45, %v1174_v51 }
 0xb50   :  { %v1177_v58 = vrot.slane %v1176_v53, 2 }
 0xb52   :  { %v1178_v52 = vadd.f32 %v1177_v58, %v1176_v53 }
 0xb53   :  { %v1189_v62 = vpop.permute.xlu0 %1188 }
 0xb54   :  { %v1179_v54 = vrot.slane %v1178_v52, 1  ;;  %v1206_v1 = vmul.f32 %v1189_v62, %v1908_v18 }
 0xb56   :  { %v1180_v56 = vadd.f32 %v1179_v54, %v1178_v52 }
 0xb58   :  { %v1185_v57 = vadd.f32 %v1183_v55, %v1180_v56 }
 0xb5a   :  { %1221 = vperm.xlu1 %1504, %v1185_v57  }
 0xb5b   :  { %v1194_v60 = vpop.permute.xlu1 %1193 }
 0xb5c   :  { %v1207_v63 = vmul.f32 %v1194_v60, %v1906_v16 }
 0xb5e   :  { %v1210_v11 = vadd.f32 %v1207_v63, %v1206_v1 }
 0xbc0   :  { %v1199_v0 = vpop.permute.xlu1 %1198 }
 0xbc1   :  { %v1208_v14 = vmul.f32 %v1199_v0, %v1914_v26 }
 0xbc3   :  { %v1211_v15 = vadd.f32 %v1210_v11, %v1208_v14 }
 0xbc4   :  { %v1204_v12 = vpop.permute.xlu0 %1203 }
 0xbc5   :  { %v1209_v2 = vmul.f32 %v1204_v12, %v1917_v28 }
 0xbc7   :  { %v1212_v3 = vadd.f32 %v1211_v15, %v1209_v2 }
 0xbc9   :  { %v1213_v4 = vrot.slane %v1212_v3, 4 }
 0xbcb   :  { %v1214_v38 = vadd.f32 %v1213_v4, %v1212_v3 }
 0xbcd   :  { %v1215_v39 = vrot.slane %v1214_v38, 2 }
 0xbcf   :  { %v1216_v48 = vadd.f32 %v1215_v39, %v1214_v38 }
 0xbd1   :  { %v1217_v46 = vrot.slane %v1216_v48, 1 }
 0xbd3   :  { %v1218_v5 = vadd.f32 %v1217_v46, %v1216_v48 }
 0xbd9   :  { %v1222_v8 = vpop.permute.xlu1 %1221 }
 0xbda   :  { %v1224_v9 = vadd.f32 %v1222_v8, %v1218_v5 }
 0xbdc   :  { %1225 = vst [vmem:[%s1965_s4] sm:$0x1] %v1224_v9 }

</bundles_post_ra>
